<compile_context>
chip_gen: v7x
topology: tpu7x:2x2x1
jax: 0.10.0
libtpu: 0.0.40
codegen_flags: <defaults>
</compile_context>

<pallas_src>
import functools
import math

import jax
import jax.numpy as jnp
from jax import lax
from jax.experimental import pallas as pl
from jax.experimental.pallas import tpu as pltpu

EPS = 1e-5          # PyTorch nn.LayerNorm default
_NEG_INF = -1e30


def _layernorm(x, g, b):
    x = x.astype(jnp.float32)
    mu = jnp.mean(x, axis=-1, keepdims=True)
    var = jnp.mean(jnp.square(x - mu), axis=-1, keepdims=True)
    return (x - mu) * lax.rsqrt(var + EPS) * g + b


# ----------------------------------------------------------------------------------
# Fused kernel: all residual attention blocks + MaPLE prompt injection + final head.
# Grid = (batch_blocks, num_layers); layer axis is the carried ("arbitrary") axis.
# ----------------------------------------------------------------------------------
def maple_text_kernel(x0_ref, eos_ref,
                      ln1g_ref, ln1b_ref, wqkv_ref, bqkv_ref,
                      wo_ref, bo_ref, ln2g_ref, ln2b_ref,
                      wfc_ref, bfc_ref, wproj_ref, bproj_ref,
                      deep_ref, lnfg_ref, lnfb_ref, tproj_ref,
                      o_ref,
                      acc_ref, ctx_ref, mask_ref,
                      *, num_heads, n_deep, n_ctx):
    l = pl.program_id(1)
    n_layers = pl.num_programs(1)

    TB, S, D = acc_ref.shape
    Dh = D // num_heads
    scale = 1.0 / math.sqrt(Dh)

    # ---- layer 0 of each batch block: init carry + build causal mask once ----
    @pl.when(l == 0)
    def _():
        acc_ref[...] = x0_ref[...].astype(jnp.float32)
        r = lax.broadcasted_iota(jnp.int32, (S, S), 0)
        c = lax.broadcasted_iota(jnp.int32, (S, S), 1)
        mask_ref[...] = jnp.where(c <= r, 0.0, _NEG_INF).astype(jnp.float32)

    # ---- MaPLE deep compound-prompt injection (before layers 1 .. n_deep) ----
    if n_deep > 0:
        @pl.when(jnp.logical_and(l >= 1, l <= n_deep))
        def _():
            # deep_ref[l-1] is already laid out as (S, D) with the ctx at rows 1..n_ctx
            ctx_full = deep_ref[l - 1]
            row = lax.broadcasted_iota(jnp.int32, (S, 1), 0)
            keep = jnp.logical_or(row < 1, row > n_ctx)            # keep SOS + suffix
            acc_ref[...] = jnp.where(keep[None], acc_ref[...], ctx_full[None])

    # ---- residual attention block (LN1 -> MHA -> LN2 -> QuickGELU MLP) ----
    x = acc_ref[...]                                               # (TB, S, D) f32
    x2 = x.reshape(TB * S, D)

    xn = _layernorm(x2, ln1g_ref[0, 0], ln1b_ref[0, 0])
    qkv = jnp.dot(xn.astype(jnp.bfloat16), wqkv_ref[0],
                  preferred_element_type=jnp.float32) + bqkv_ref[0, 0]   # (TB*S, 3D)

    q = qkv[:, 0 * D:1 * D].reshape(TB, S, D)
    k = qkv[:, 1 * D:2 * D].reshape(TB, S, D)
    v = qkv[:, 2 * D:3 * D].reshape(TB, S, D)
    causal = mask_ref[...]                                          # (S, S) f32

    # Per-head softmax context written into a (TB, S, D) VMEM slab; the output
    # projection is then ONE K=D MXU matmul (no K=Dh accumulation chain).
    for h in range(num_heads):                                      # static unroll
        lo, hi = h * Dh, (h + 1) * Dh
        qh = q[:, :, lo:hi].astype(jnp.bfloat16)
        kh = k[:, :, lo:hi].astype(jnp.bfloat16)
        vh = v[:, :, lo:hi].astype(jnp.bfloat16)
        s = jnp.einsum('bqd,bkd->bqk', qh, kh,
                       preferred_element_type=jnp.float32) * scale + causal[None]
        s = s - jnp.max(s, axis=-1, keepdims=True)
        p = jnp.exp(s)
        p = p * pl.reciprocal(jnp.sum(p, axis=-1, keepdims=True), approx=True)
        ctx_ref[:, :, lo:hi] = jnp.einsum('bqk,bkd->bqd', p.astype(jnp.bfloat16), vh,
                                          preferred_element_type=jnp.float32)

    attn = jnp.dot(ctx_ref[...].reshape(TB * S, D).astype(jnp.bfloat16),
                   wo_ref[0], preferred_element_type=jnp.float32)   # single K=D matmul
    x2 = x2 + attn + bo_ref[0, 0]

    xn2 = _layernorm(x2, ln2g_ref[0, 0], ln2b_ref[0, 0])
    h1 = jnp.dot(xn2.astype(jnp.bfloat16), wfc_ref[0],
                 preferred_element_type=jnp.float32) + bfc_ref[0, 0]
    h1 = (h1 * jax.nn.sigmoid(1.702 * h1)).astype(jnp.bfloat16)     # QuickGELU, bf16
    mlp = jnp.dot(h1, wproj_ref[0],
                  preferred_element_type=jnp.float32) + bproj_ref[0, 0]
    x2 = x2 + mlp

    acc_ref[...] = x2.reshape(TB, S, D)

    # ---- fused head: EOS one-hot gather + ln_final + text_projection ----
    @pl.when(l == n_layers - 1)
    def _():
        x3 = x2.reshape(TB, S, D)
        col = lax.broadcasted_iota(jnp.int32, (TB, S), 1)
        onehot = (col == eos_ref[...]).astype(jnp.float32)           # (TB, S)
        xg = jnp.sum(x3 * onehot[:, :, None], axis=1)                # exact select (TB, D)
        xg = _layernorm(xg, lnfg_ref[0], lnfb_ref[0])
        o_ref[...] = jnp.dot(xg.astype(jnp.bfloat16), tproj_ref[...],
                             preferred_element_type=jnp.float32).astype(o_ref.dtype)


# ----------------------------------------------------------------------------------
# Full TextEncoder_MaPLE forward
# ----------------------------------------------------------------------------------
def text_encoder_maple(prompts, tokenized_prompts, compound_prompts_deeper_text, params):
    B, S, D = prompts.shape
    H = params["num_heads"]
    L = params["num_layers"]
    P = params["text_proj"].shape[-1]
    assert D % H == 0

    # glue: positional-embedding add + EOS index (argmax == EOT token, CLIP contract)
    x0 = prompts + params["pos_emb"][None].astype(prompts.dtype)
    eos_idx = jnp.argmax(tokenized_prompts, axis=-1).astype(jnp.int32)

    # Lane-dense score tiles: pad S (multiple of 128 at real CLIP sizes, 8 at toy
    # sizes).  Padded keys are masked by causality; padded queries never gathered.
    S_pad = (-(-S // 128) * 128) if S > 64 else (-(-S // 8) * 8)
    if S_pad != S:
        x0 = jnp.pad(x0, ((0, 0), (0, S_pad - S), (0, 0)))

    n_deep = len(compound_prompts_deeper_text)
    if n_deep > 0:
        deep = jnp.stack([c.astype(jnp.float32) for c in compound_prompts_deeper_text])
        n_ctx = int(deep.shape[1])
        deep_full = jnp.zeros((n_deep, S_pad, D), jnp.float32)
        deep_full = deep_full.at[:, 1:1 + n_ctx, :].set(deep)        # ctx at rows 1..n_ctx
    else:
        deep_full = jnp.zeros((1, S_pad, D), jnp.float32)             # dummy, never read
        n_ctx = 0

    # Batch blocking: minimize nb so the L layers of weights stream from HBM once
    # (per TensorCore); TB capped so activations fit VMEM.  (On v7x one may lower
    # TB_cap / force nb even to use both TCs — traded off against weight restream.)
    TB_cap = 16
    TB = B if B <= TB_cap else TB_cap
    B_pad = -(-B // TB) * TB
    if B_pad != B:
        x0 = jnp.pad(x0, ((0, B_pad - B), (0, 0), (0, 0)))
        eos_idx = jnp.pad(eos_idx, (0, B_pad - B))
    nb = B_pad // TB
    eos2d = eos_idx.reshape(B_pad, 1)

    def per_layer(shape):
        return pl.BlockSpec((1,) + shape, lambda b, l: (l,) + (0,) * len(shape))

    def const(shape):
        return pl.BlockSpec(shape, lambda b, l: (0,) * len(shape))

    in_specs = [
        pl.BlockSpec((TB, S_pad, D), lambda b, l: (b, 0, 0)),         # x0
        pl.BlockSpec((TB, 1), lambda b, l: (b, 0)),                   # eos indices
        per_layer((1, D)), per_layer((1, D)),                         # ln1 g/b
        per_layer((D, 3 * D)), per_layer((1, 3 * D)),                 # wqkv, bqkv
        per_layer((D, D)), per_layer((1, D)),                         # wo, bo
        per_layer((1, D)), per_layer((1, D)),                         # ln2 g/b
        per_layer((D, 4 * D)), per_layer((1, 4 * D)),                 # wfc, bfc
        per_layer((4 * D, D)), per_layer((1, D)),                     # wproj, bproj
        const(tuple(deep_full.shape)),                                # deep prompts
        const((1, D)), const((1, D)),                                 # ln_final g/b
        const((D, P)),                                                # text_projection
    ]
    out_spec = pl.BlockSpec((TB, P), lambda b, l: (b, 0))

    # explicit VMEM budget (double-buffered per-layer streams + live intermediates)
    bpe_x = jnp.dtype(x0.dtype).itemsize
    w_bytes = (D * 3 * D + D * D + D * 4 * D + 4 * D * D) * 2          # bf16 weights/layer
    v_bytes = (3 * D + D + 4 * D + D + 4 * D) * 4                      # biases + LN /layer
    x0_bytes = TB * S_pad * D * bpe_x
    scratch_bytes = 2 * TB * S_pad * D * 4 + S_pad * S_pad * 4          # acc + ctx + mask
    inter_bytes = TB * S_pad * (D + 3 * D + D + D + 4 * D + 2 * D) * 4  # xn,qkv,attn,xn2,h1,mlp
    score_bytes = 3 * TB * S_pad * S_pad * 4                            # s, p (+ headroom)
    const_bytes = deep_full.size * 4 + D * P * 2 + (2 * D + TB * P + B_pad) * 4
    est = (2 * (w_bytes + v_bytes + x0_bytes) + scratch_bytes
           + inter_bytes + score_bytes + 2 * const_bytes)
    try:
        phys = int(getattr(pltpu.get_tpu_info(), "vmem_capacity_bytes", 64 * 2 ** 20))
    except Exception:
        phys = 64 * 2 ** 20
    vmem_limit = int(min(max(est * 3 // 2, 32 * 2 ** 20), (phys * 7) // 8))

    kernel = functools.partial(maple_text_kernel,
                               num_heads=H, n_deep=n_deep, n_ctx=n_ctx)

    out = pl.pallas_call(
        kernel,
        out_shape=jax.ShapeDtypeStruct((B_pad, P), prompts.dtype),
        grid_spec=pltpu.PrefetchScalarGridSpec(
            num_scalar_prefetch=0,
            grid=(nb, L),
            in_specs=in_specs,
            out_specs=out_spec,
            scratch_shapes=[pltpu.VMEM((TB, S_pad, D), jnp.float32),   # residual carry
                            pltpu.VMEM((TB, S_pad, D), jnp.float32),   # head-context slab
                            pltpu.VMEM((S_pad, S_pad), jnp.float32)],  # causal mask
        ),
        compiler_params=pltpu.CompilerParams(
            dimension_semantics=("parallel", "arbitrary"),
            vmem_limit_bytes=vmem_limit,
        ),
    )(x0, eos2d,
      params["ln1_g"], params["ln1_b"], params["wqkv_t"], params["bqkv"],
      params["wo_t"], params["bo"], params["ln2_g"], params["ln2_b"],
      params["wfc_t"], params["bfc"], params["wproj_t"], params["bproj"],
      deep_full, params["lnf_g"], params["lnf_b"], params["text_proj"])

    return out[:B]


# ----------------------------------------------------------------------------------
# Deterministic parameter construction (synthetic, no checkpoint load).
# Weights stacked over layers, pre-transposed to (in, out) (== torch W.T), bf16.
# ----------------------------------------------------------------------------------
def init_params(key, *, num_layers, seq, width, heads, proj_dim):
    keys = jax.random.split(key, 2 + num_layers)
    D = width

    def nrm(k, shape, scale=0.02):
        return scale * jax.random.normal(k, shape, dtype=jnp.float32)

    wqkv, wo, wfc, wproj = [], [], [], []
    for l in range(num_layers):
        lk = jax.random.split(keys[2 + l], 4)
        wqkv.append(nrm(lk[0], (D, 3 * D)))
        wo.append(nrm(lk[1], (D, D)))
        wfc.append(nrm(lk[2], (D, 4 * D)))
        wproj.append(nrm(lk[3], (4 * D, D)))

    return {
        "num_heads": heads,
        "num_layers": num_layers,
        "pos_emb": nrm(keys[0], (seq, D)),
        "lnf_g": jnp.ones((1, D), jnp.float32),
        "lnf_b": jnp.zeros((1, D), jnp.float32),
        "text_proj": nrm(keys[1], (D, proj_dim)).astype(jnp.bfloat16),
        "ln1_g": jnp.ones((num_layers, 1, D), jnp.float32),
        "ln1_b": jnp.zeros((num_layers, 1, D), jnp.float32),
        "ln2_g": jnp.ones((num_layers, 1, D), jnp.float32),
        "ln2_b": jnp.zeros((num_layers, 1, D), jnp.float32),
        "wqkv_t": jnp.stack(wqkv).astype(jnp.bfloat16),
        "bqkv": jnp.zeros((num_layers, 1, 3 * D), jnp.float32),
        "wo_t": jnp.stack(wo).astype(jnp.bfloat16),
        "bo": jnp.zeros((num_layers, 1, D), jnp.float32),
        "wfc_t": jnp.stack(wfc).astype(jnp.bfloat16),
        "bfc": jnp.zeros((num_layers, 1, 4 * D), jnp.float32),
        "wproj_t": jnp.stack(wproj).astype(jnp.bfloat16),
        "bproj": jnp.zeros((num_layers, 1, D), jnp.float32),
    }


if __name__ == "__main__":
    B, S, D, H, P = 2, 8, 32, 4, 16      # n_cls, seq_len, width, heads, proj_dim
    NUM_LAYERS = 2
    N_CTX = 2                            # MaPLE compound-prompt length

    key = jax.random.PRNGKey(0)
    k_prompts, k_tok, k_deep, k_params = jax.random.split(key, 4)

    params = init_params(k_params, num_layers=NUM_LAYERS, seq=S, width=D,
                         heads=H, proj_dim=P)

    prompts = 0.02 * jax.random.normal(k_prompts, (B, S, D), dtype=jnp.float32)
    tokenized_prompts = jax.random.randint(k_tok, (B, S), 0, 100, dtype=jnp.int32)
    compound_prompts_deeper_text = [
        0.02 * jax.random.normal(k_deep, (N_CTX, D), dtype=jnp.float32)
    ]  # one deep prompt -> injected before layer 1

    out = text_encoder_maple(prompts, tokenized_prompts,
                             compound_prompts_deeper_text, params)
    jax.block_until_ready(out)
    assert out.shape == (B, P)
    print("KERNEL_OK")
</pallas_src>

<mosaic_0001>
module attributes {stable_mosaic.version = 11 : i64} {
  func.func @maple_text_kernel(%arg0: i32, %arg1: i32, %arg2: memref<2x8x32xf32, #tpu.memory_space<vmem>>, %arg3: memref<2x1xi32, #tpu.memory_space<vmem>>, %arg4: memref<1x1x32xf32, #tpu.memory_space<vmem>>, %arg5: memref<1x1x32xf32, #tpu.memory_space<vmem>>, %arg6: memref<1x32x96xbf16, #tpu.memory_space<vmem>>, %arg7: memref<1x1x96xf32, #tpu.memory_space<vmem>>, %arg8: memref<1x32x32xbf16, #tpu.memory_space<vmem>>, %arg9: memref<1x1x32xf32, #tpu.memory_space<vmem>>, %arg10: memref<1x1x32xf32, #tpu.memory_space<vmem>>, %arg11: memref<1x1x32xf32, #tpu.memory_space<vmem>>, %arg12: memref<1x32x128xbf16, #tpu.memory_space<vmem>>, %arg13: memref<1x1x128xf32, #tpu.memory_space<vmem>>, %arg14: memref<1x128x32xbf16, #tpu.memory_space<vmem>>, %arg15: memref<1x1x32xf32, #tpu.memory_space<vmem>>, %arg16: memref<1x8x32xf32, #tpu.memory_space<vmem>>, %arg17: memref<1x32xf32, #tpu.memory_space<vmem>>, %arg18: memref<1x32xf32, #tpu.memory_space<vmem>>, %arg19: memref<32x16xbf16, #tpu.memory_space<vmem>>, %arg20: memref<2x16xf32, #tpu.memory_space<vmem>>, %arg21: memref<2x8x32xf32, #tpu.memory_space<vmem>>, %arg22: memref<2x8x32xf32, #tpu.memory_space<vmem>>, %arg23: memref<8x8xf32, #tpu.memory_space<vmem>>) attributes {dimension_semantics = [#tpu.dimension_semantics<parallel>, #tpu.dimension_semantics<arbitrary>], iteration_bounds = array<i64: 1, 2>, scalar_prefetch = 0 : i64, scratch_operands = 3 : i64, tpu.core_type = #tpu.core_type<tc>, window_params = [{transform_indices = @transform_0, window_bounds = array<i64: 2, 8, 32>}, {transform_indices = @transform_1, window_bounds = array<i64: 2, 1>}, {transform_indices = @transform_2, window_bounds = array<i64: 1, 1, 32>}, {transform_indices = @transform_3, window_bounds = array<i64: 1, 1, 32>}, {transform_indices = @transform_4, window_bounds = array<i64: 1, 32, 96>}, {transform_indices = @transform_5, window_bounds = array<i64: 1, 1, 96>}, {transform_indices = @transform_6, window_bounds = array<i64: 1, 32, 32>}, {transform_indices = @transform_7, window_bounds = array<i64: 1, 1, 32>}, {transform_indices = @transform_8, window_bounds = array<i64: 1, 1, 32>}, {transform_indices = @transform_9, window_bounds = array<i64: 1, 1, 32>}, {transform_indices = @transform_10, window_bounds = array<i64: 1, 32, 128>}, {transform_indices = @transform_11, window_bounds = array<i64: 1, 1, 128>}, {transform_indices = @transform_12, window_bounds = array<i64: 1, 128, 32>}, {transform_indices = @transform_13, window_bounds = array<i64: 1, 1, 32>}, {pipeline_mode = #tpu.pipeline_mode<synchronous>, transform_indices = @transform_14, window_bounds = array<i64: 1, 8, 32>}, {pipeline_mode = #tpu.pipeline_mode<synchronous>, transform_indices = @transform_15, window_bounds = array<i64: 1, 32>}, {pipeline_mode = #tpu.pipeline_mode<synchronous>, transform_indices = @transform_16, window_bounds = array<i64: 1, 32>}, {pipeline_mode = #tpu.pipeline_mode<synchronous>, transform_indices = @transform_17, window_bounds = array<i64: 32, 16>}, {transform_indices = @transform_18, window_bounds = array<i64: 2, 16>}]} {
    %c0_i32 = arith.constant 0 : i32
    %0 = arith.cmpi eq, %arg1, %c0_i32 : i32
    %1 = arith.extui %0 : i1 to i32
    %c0_i32_0 = arith.constant 0 : i32
    %2 = arith.cmpi ne, %1, %c0_i32_0 : i32
    scf.if %2 {
      %c0_95 = arith.constant 0 : index
      %c0_96 = arith.constant 0 : index
      %c0_97 = arith.constant 0 : index
      %226 = vector.load %arg2[%c0_95, %c0_96, %c0_97] : memref<2x8x32xf32, #tpu.memory_space<vmem>>, vector<2x8x32xf32>
      %c0_98 = arith.constant 0 : index
      %c0_99 = arith.constant 0 : index
      %c0_100 = arith.constant 0 : index
      %227 = vector.load %arg21[%c0_98, %c0_99, %c0_100] : memref<2x8x32xf32, #tpu.memory_space<vmem>>, vector<2x8x32xf32>
      tpu.vector_store %arg21[%c0_98, %c0_99, %c0_100], %226 {strides = array<i32>} : memref<2x8x32xf32, #tpu.memory_space<vmem>>, vector<2x8x32xf32>,
      %228 = tpu.iota {dimensions = array<i32: 0>} : vector<8x8xi32>
      %229 = tpu.iota {dimensions = array<i32: 1>} : vector<8x8xi32>
      %230 = arith.cmpi sle, %229, %228 : vector<8x8xi32>
      %cst_101 = arith.constant 0.000000e+00 : f32
      %cst_102 = arith.constant -1.000000e+30 : f32
      %231 = vector.broadcast %cst_101 : f32 to vector<8x8xf32>
      %232 = vector.broadcast %cst_102 : f32 to vector<8x8xf32>
      %233 = arith.select %230, %231, %232 : vector<8x8xi1>, vector<8x8xf32>
      %c0_103 = arith.constant 0 : index
      %c0_104 = arith.constant 0 : index
      %234 = vector.load %arg23[%c0_103, %c0_104] : memref<8x8xf32, #tpu.memory_space<vmem>>, vector<8x8xf32>
      tpu.vector_store %arg23[%c0_103, %c0_104], %233 {strides = array<i32>} : memref<8x8xf32, #tpu.memory_space<vmem>>, vector<8x8xf32>,
    } else {
    }
    %c1_i32 = arith.constant 1 : i32
    %3 = arith.cmpi sge, %arg1, %c1_i32 : i32
    %c1_i32_1 = arith.constant 1 : i32
    %4 = arith.cmpi sle, %arg1, %c1_i32_1 : i32
    %5 = arith.andi %3, %4 : i1
    %6 = arith.extui %5 : i1 to i32
    %c0_i32_2 = arith.constant 0 : i32
    %7 = arith.cmpi ne, %6, %c0_i32_2 : i32
    scf.if %7 {
      %c1_i32_95 = arith.constant 1 : i32
      %226 = arith.subi %arg1, %c1_i32_95 : i32
      %227 = arith.index_cast %226 : i32 to index
      %c0_96 = arith.constant 0 : index
      %c0_97 = arith.constant 0 : index
      %228 = vector.load %arg16[%227, %c0_96, %c0_97] : memref<1x8x32xf32, #tpu.memory_space<vmem>>, vector<1x8x32xf32>
      %229 = vector.shape_cast %228 : vector<1x8x32xf32> to vector<8x32xf32>
      %230 = tpu.iota {dimensions = array<i32: 0>} : vector<8x1xi32>
      %c1_i32_98 = arith.constant 1 : i32
      %231 = vector.broadcast %c1_i32_98 : i32 to vector<8x1xi32>
      %232 = arith.cmpi slt, %230, %231 : vector<8x1xi32>
      %c2_i32 = arith.constant 2 : i32
      %233 = vector.broadcast %c2_i32 : i32 to vector<8x1xi32>
      %234 = arith.cmpi sgt, %230, %233 : vector<8x1xi32>
      %235 = arith.ori %232, %234 : vector<8x1xi1>
      %236 = vector.shape_cast %235 : vector<8x1xi1> to vector<1x8x1xi1>
      %c0_99 = arith.constant 0 : index
      %c0_100 = arith.constant 0 : index
      %c0_101 = arith.constant 0 : index
      %237 = vector.load %arg21[%c0_99, %c0_100, %c0_101] : memref<2x8x32xf32, #tpu.memory_space<vmem>>, vector<2x8x32xf32>
      %238 = vector.shape_cast %229 : vector<8x32xf32> to vector<1x8x32xf32>
      %239 = vector.shape_cast %236 : vector<1x8x1xi1> to vector<1x8x1xi1>
      %240 = vector.broadcast %239 : vector<1x8x1xi1> to vector<2x8x32xi1>
      %241 = vector.shape_cast %238 : vector<1x8x32xf32> to vector<1x8x32xf32>
      %242 = vector.broadcast %241 : vector<1x8x32xf32> to vector<2x8x32xf32>
      %243 = arith.select %240, %237, %242 : vector<2x8x32xi1>, vector<2x8x32xf32>
      %c0_102 = arith.constant 0 : index
      %c0_103 = arith.constant 0 : index
      %c0_104 = arith.constant 0 : index
      %244 = vector.load %arg21[%c0_102, %c0_103, %c0_104] : memref<2x8x32xf32, #tpu.memory_space<vmem>>, vector<2x8x32xf32>
      tpu.vector_store %arg21[%c0_102, %c0_103, %c0_104], %243 {strides = array<i32>} : memref<2x8x32xf32, #tpu.memory_space<vmem>>, vector<2x8x32xf32>,
    } else {
    }
    %c0 = arith.constant 0 : index
    %c0_3 = arith.constant 0 : index
    %c0_4 = arith.constant 0 : index
    %8 = vector.load %arg21[%c0, %c0_3, %c0_4] : memref<2x8x32xf32, #tpu.memory_space<vmem>>, vector<2x8x32xf32>
    %9 = vector.shape_cast %8 : vector<2x8x32xf32> to vector<16x32xf32>
    %c0_5 = arith.constant 0 : index
    %c0_6 = arith.constant 0 : index
    %c0_7 = arith.constant 0 : index
    %10 = vector.load %arg4[%c0_5, %c0_6, %c0_7] : memref<1x1x32xf32, #tpu.memory_space<vmem>>, vector<1x1x32xf32>
    %11 = vector.shape_cast %10 : vector<1x1x32xf32> to vector<32xf32>
    %c0_8 = arith.constant 0 : index
    %c0_9 = arith.constant 0 : index
    %c0_10 = arith.constant 0 : index
    %12 = vector.load %arg5[%c0_8, %c0_9, %c0_10] : memref<1x1x32xf32, #tpu.memory_space<vmem>>, vector<1x1x32xf32>
    %13 = vector.shape_cast %12 : vector<1x1x32xf32> to vector<32xf32>
    %cst = arith.constant dense<0.000000e+00> : vector<16xf32>
    %14 = vector.multi_reduction <add>, %9, %cst [1] : vector<16x32xf32> to vector<16xf32>
    %15 = vector.shape_cast %14 : vector<16xf32> to vector<16x1xf32>
    %cst_11 = arith.constant 3.200000e+01 : f32
    %16 = vector.broadcast %cst_11 : f32 to vector<16x1xf32>
    %17 = arith.divf %15, %16 : vector<16x1xf32>
    %18 = vector.broadcast %17 : vector<16x1xf32> to vector<16x32xf32>
    %19 = arith.subf %9, %18 : vector<16x32xf32>
    %20 = arith.mulf %19, %19 : vector<16x32xf32>
    %cst_12 = arith.constant dense<0.000000e+00> : vector<16xf32>
    %21 = vector.multi_reduction <add>, %20, %cst_12 [1] : vector<16x32xf32> to vector<16xf32>
    %22 = vector.shape_cast %21 : vector<16xf32> to vector<16x1xf32>
    %cst_13 = arith.constant 3.200000e+01 : f32
    %23 = vector.broadcast %cst_13 : f32 to vector<16x1xf32>
    %24 = arith.divf %22, %23 : vector<16x1xf32>
    %25 = vector.broadcast %17 : vector<16x1xf32> to vector<16x32xf32>
    %26 = arith.subf %9, %25 : vector<16x32xf32>
    %cst_14 = arith.constant 9.99999974E-6 : f32
    %27 = vector.broadcast %cst_14 : f32 to vector<16x1xf32>
    %28 = arith.addf %24, %27 : vector<16x1xf32>
    %29 = math.rsqrt %28 : vector<16x1xf32>
    %30 = vector.broadcast %29 : vector<16x1xf32> to vector<16x32xf32>
    %31 = arith.mulf %26, %30 : vector<16x32xf32>
    %32 = vector.shape_cast %11 : vector<32xf32> to vector<1x32xf32>
    %33 = vector.broadcast %32 : vector<1x32xf32> to vector<16x32xf32>
    %34 = arith.mulf %31, %33 : vector<16x32xf32>
    %35 = vector.shape_cast %13 : vector<32xf32> to vector<1x32xf32>
    %36 = vector.broadcast %35 : vector<1x32xf32> to vector<16x32xf32>
    %37 = arith.addf %34, %36 : vector<16x32xf32>
    %38 = arith.truncf %37 : vector<16x32xf32> to vector<16x32xbf16>
    %c0_15 = arith.constant 0 : index
    %c0_16 = arith.constant 0 : index
    %c0_17 = arith.constant 0 : index
    %39 = vector.load %arg6[%c0_15, %c0_16, %c0_17] : memref<1x32x96xbf16, #tpu.memory_space<vmem>>, vector<1x32x96xbf16>
    %40 = vector.shape_cast %39 : vector<1x32x96xbf16> to vector<32x96xbf16>
    %cst_18 = arith.constant dense<0.000000e+00> : vector<16x96xf32>
    %41 = tpu.matmul %38, %40, %cst_18 {dimension_numbers = #tpu.dot_dimension_numbers<[1], [0], [0], [1], [0, 0, 1, 1], [], []>} : vector<16x32xbf16>, vector<32x96xbf16>, vector<16x96xf32> -> vector<16x96xf32>
    %c0_19 = arith.constant 0 : index
    %c0_20 = arith.constant 0 : index
    %c0_21 = arith.constant 0 : index
    %42 = vector.load %arg7[%c0_19, %c0_20, %c0_21] : memref<1x1x96xf32, #tpu.memory_space<vmem>>, vector<1x1x96xf32>
    %43 = vector.shape_cast %42 : vector<1x1x96xf32> to vector<96xf32>
    %44 = vector.shape_cast %43 : vector<96xf32> to vector<1x96xf32>
    %45 = vector.broadcast %44 : vector<1x96xf32> to vector<16x96xf32>
    %46 = arith.addf %41, %45 : vector<16x96xf32>
    %47 = vector.extract_strided_slice %46 {offsets = [0, 0], sizes = [16, 32], strides = [1, 1]} : vector<16x96xf32> to vector<16x32xf32>
    %48 = vector.shape_cast %47 : vector<16x32xf32> to vector<2x8x32xf32>
    %49 = vector.extract_strided_slice %46 {offsets = [0, 32], sizes = [16, 32], strides = [1, 1]} : vector<16x96xf32> to vector<16x32xf32>
    %50 = vector.shape_cast %49 : vector<16x32xf32> to vector<2x8x32xf32>
    %51 = vector.extract_strided_slice %46 {offsets = [0, 64], sizes = [16, 32], strides = [1, 1]} : vector<16x96xf32> to vector<16x32xf32>
    %52 = vector.shape_cast %51 : vector<16x32xf32> to vector<2x8x32xf32>
    %c0_22 = arith.constant 0 : index
    %c0_23 = arith.constant 0 : index
    %53 = vector.load %arg23[%c0_22, %c0_23] : memref<8x8xf32, #tpu.memory_space<vmem>>, vector<8x8xf32>
    %54 = vector.extract_strided_slice %48 {offsets = [0, 0, 0], sizes = [2, 8, 8], strides = [1, 1, 1]} : vector<2x8x32xf32> to vector<2x8x8xf32>
    %55 = arith.truncf %54 : vector<2x8x8xf32> to vector<2x8x8xbf16>
    %56 = vector.extract_strided_slice %50 {offsets = [0, 0, 0], sizes = [2, 8, 8], strides = [1, 1, 1]} : vector<2x8x32xf32> to vector<2x8x8xf32>
    %57 = arith.truncf %56 : vector<2x8x8xf32> to vector<2x8x8xbf16>
    %58 = vector.extract_strided_slice %52 {offsets = [0, 0, 0], sizes = [2, 8, 8], strides = [1, 1, 1]} : vector<2x8x32xf32> to vector<2x8x8xf32>
    %59 = arith.truncf %58 : vector<2x8x8xf32> to vector<2x8x8xbf16>
    "tpu.trace_start"() <{level = 10 : i32, message = "bqd,bkd->bqk"}> : () -> ()
    %cst_24 = arith.constant dense<0.000000e+00> : vector<2x8x8xf32>
    %60 = tpu.matmul %55, %57, %cst_24 {dimension_numbers = #tpu.dot_dimension_numbers<[2], [2], [1], [1], [0, 0, 0, 1, 1, 1], [0], [0]>} : vector<2x8x8xbf16>, vector<2x8x8xbf16>, vector<2x8x8xf32> -> vector<2x8x8xf32>
    "tpu.trace_stop"() : () -> ()
    %cst_25 = arith.constant 0.353553385 : f32
    %61 = vector.broadcast %cst_25 : f32 to vector<2x8x8xf32>
    %62 = arith.mulf %60, %61 : vector<2x8x8xf32>
    %63 = vector.shape_cast %53 : vector<8x8xf32> to vector<1x8x8xf32>
    %64 = vector.broadcast %63 : vector<1x8x8xf32> to vector<2x8x8xf32>
    %65 = arith.addf %62, %64 : vector<2x8x8xf32>
    %cst_26 = arith.constant dense<0xFF800000> : vector<2x8xf32>
    %66 = vector.multi_reduction <maximumf>, %65, %cst_26 [2] : vector<2x8x8xf32> to vector<2x8xf32>
    %67 = vector.shape_cast %66 : vector<2x8xf32> to vector<2x8x1xf32>
    %68 = vector.broadcast %67 : vector<2x8x1xf32> to vector<2x8x8xf32>
    %69 = arith.subf %65, %68 : vector<2x8x8xf32>
    %70 = math.exp %69 : vector<2x8x8xf32>
    %cst_27 = arith.constant dense<0.000000e+00> : vector<2x8xf32>
    %71 = vector.multi_reduction <add>, %70, %cst_27 [2] : vector<2x8x8xf32> to vector<2x8xf32>
    %72 = vector.shape_cast %71 : vector<2x8xf32> to vector<2x8x1xf32>
    %73 = tpu.reciprocal %72 {approx = true} : vector<2x8x1xf32> -> vector<2x8x1xf32>
    %74 = vector.broadcast %73 : vector<2x8x1xf32> to vector<2x8x8xf32>
    %75 = arith.mulf %70, %74 : vector<2x8x8xf32>
    %76 = arith.truncf %75 : vector<2x8x8xf32> to vector<2x8x8xbf16>
    "tpu.trace_start"() <{level = 10 : i32, message = "bqk,bkd->bqd"}> : () -> ()
    %cst_28 = arith.constant dense<0.000000e+00> : vector<2x8x8xf32>
    %77 = tpu.matmul %76, %59, %cst_28 {dimension_numbers = #tpu.dot_dimension_numbers<[2], [1], [1], [2], [0, 0, 0, 1, 1, 2], [0], [0]>} : vector<2x8x8xbf16>, vector<2x8x8xbf16>, vector<2x8x8xf32> -> vector<2x8x8xf32>
    "tpu.trace_stop"() : () -> ()
    %c0_29 = arith.constant 0 : index
    %c0_30 = arith.constant 0 : index
    %c0_31 = arith.constant 0 : index
    %78 = vector.load %arg22[%c0_29, %c0_30, %c0_31] : memref<2x8x32xf32, #tpu.memory_space<vmem>>, vector<2x8x8xf32>
    tpu.vector_store %arg22[%c0_29, %c0_30, %c0_31], %77 {strides = array<i32>} : memref<2x8x32xf32, #tpu.memory_space<vmem>>, vector<2x8x8xf32>,
    %79 = vector.extract_strided_slice %48 {offsets = [0, 0, 8], sizes = [2, 8, 8], strides = [1, 1, 1]} : vector<2x8x32xf32> to vector<2x8x8xf32>
    %80 = arith.truncf %79 : vector<2x8x8xf32> to vector<2x8x8xbf16>
    %81 = vector.extract_strided_slice %50 {offsets = [0, 0, 8], sizes = [2, 8, 8], strides = [1, 1, 1]} : vector<2x8x32xf32> to vector<2x8x8xf32>
    %82 = arith.truncf %81 : vector<2x8x8xf32> to vector<2x8x8xbf16>
    %83 = vector.extract_strided_slice %52 {offsets = [0, 0, 8], sizes = [2, 8, 8], strides = [1, 1, 1]} : vector<2x8x32xf32> to vector<2x8x8xf32>
    %84 = arith.truncf %83 : vector<2x8x8xf32> to vector<2x8x8xbf16>
    "tpu.trace_start"() <{level = 10 : i32, message = "bqd,bkd->bqk"}> : () -> ()
    %cst_32 = arith.constant dense<0.000000e+00> : vector<2x8x8xf32>
    %85 = tpu.matmul %80, %82, %cst_32 {dimension_numbers = #tpu.dot_dimension_numbers<[2], [2], [1], [1], [0, 0, 0, 1, 1, 1], [0], [0]>} : vector<2x8x8xbf16>, vector<2x8x8xbf16>, vector<2x8x8xf32> -> vector<2x8x8xf32>
    "tpu.trace_stop"() : () -> ()
    %cst_33 = arith.constant 0.353553385 : f32
    %86 = vector.broadcast %cst_33 : f32 to vector<2x8x8xf32>
    %87 = arith.mulf %85, %86 : vector<2x8x8xf32>
    %88 = vector.shape_cast %53 : vector<8x8xf32> to vector<1x8x8xf32>
    %89 = vector.broadcast %88 : vector<1x8x8xf32> to vector<2x8x8xf32>
    %90 = arith.addf %87, %89 : vector<2x8x8xf32>
    %cst_34 = arith.constant dense<0xFF800000> : vector<2x8xf32>
    %91 = vector.multi_reduction <maximumf>, %90, %cst_34 [2] : vector<2x8x8xf32> to vector<2x8xf32>
    %92 = vector.shape_cast %91 : vector<2x8xf32> to vector<2x8x1xf32>
    %93 = vector.broadcast %92 : vector<2x8x1xf32> to vector<2x8x8xf32>
    %94 = arith.subf %90, %93 : vector<2x8x8xf32>
    %95 = math.exp %94 : vector<2x8x8xf32>
    %cst_35 = arith.constant dense<0.000000e+00> : vector<2x8xf32>
    %96 = vector.multi_reduction <add>, %95, %cst_35 [2] : vector<2x8x8xf32> to vector<2x8xf32>
    %97 = vector.shape_cast %96 : vector<2x8xf32> to vector<2x8x1xf32>
    %98 = tpu.reciprocal %97 {approx = true} : vector<2x8x1xf32> -> vector<2x8x1xf32>
    %99 = vector.broadcast %98 : vector<2x8x1xf32> to vector<2x8x8xf32>
    %100 = arith.mulf %95, %99 : vector<2x8x8xf32>
    %101 = arith.truncf %100 : vector<2x8x8xf32> to vector<2x8x8xbf16>
    "tpu.trace_start"() <{level = 10 : i32, message = "bqk,bkd->bqd"}> : () -> ()
    %cst_36 = arith.constant dense<0.000000e+00> : vector<2x8x8xf32>
    %102 = tpu.matmul %101, %84, %cst_36 {dimension_numbers = #tpu.dot_dimension_numbers<[2], [1], [1], [2], [0, 0, 0, 1, 1, 2], [0], [0]>} : vector<2x8x8xbf16>, vector<2x8x8xbf16>, vector<2x8x8xf32> -> vector<2x8x8xf32>
    "tpu.trace_stop"() : () -> ()
    %c0_37 = arith.constant 0 : index
    %c0_38 = arith.constant 0 : index
    %c8 = arith.constant 8 : index
    %103 = vector.load %arg22[%c0_37, %c0_38, %c8] : memref<2x8x32xf32, #tpu.memory_space<vmem>>, vector<2x8x8xf32>
    tpu.vector_store %arg22[%c0_37, %c0_38, %c8], %102 {strides = array<i32>} : memref<2x8x32xf32, #tpu.memory_space<vmem>>, vector<2x8x8xf32>,
    %104 = vector.extract_strided_slice %48 {offsets = [0, 0, 16], sizes = [2, 8, 8], strides = [1, 1, 1]} : vector<2x8x32xf32> to vector<2x8x8xf32>
    %105 = arith.truncf %104 : vector<2x8x8xf32> to vector<2x8x8xbf16>
    %106 = vector.extract_strided_slice %50 {offsets = [0, 0, 16], sizes = [2, 8, 8], strides = [1, 1, 1]} : vector<2x8x32xf32> to vector<2x8x8xf32>
    %107 = arith.truncf %106 : vector<2x8x8xf32> to vector<2x8x8xbf16>
    %108 = vector.extract_strided_slice %52 {offsets = [0, 0, 16], sizes = [2, 8, 8], strides = [1, 1, 1]} : vector<2x8x32xf32> to vector<2x8x8xf32>
    %109 = arith.truncf %108 : vector<2x8x8xf32> to vector<2x8x8xbf16>
    "tpu.trace_start"() <{level = 10 : i32, message = "bqd,bkd->bqk"}> : () -> ()
    %cst_39 = arith.constant dense<0.000000e+00> : vector<2x8x8xf32>
    %110 = tpu.matmul %105, %107, %cst_39 {dimension_numbers = #tpu.dot_dimension_numbers<[2], [2], [1], [1], [0, 0, 0, 1, 1, 1], [0], [0]>} : vector<2x8x8xbf16>, vector<2x8x8xbf16>, vector<2x8x8xf32> -> vector<2x8x8xf32>
    "tpu.trace_stop"() : () -> ()
    %cst_40 = arith.constant 0.353553385 : f32
    %111 = vector.broadcast %cst_40 : f32 to vector<2x8x8xf32>
    %112 = arith.mulf %110, %111 : vector<2x8x8xf32>
    %113 = vector.shape_cast %53 : vector<8x8xf32> to vector<1x8x8xf32>
    %114 = vector.broadcast %113 : vector<1x8x8xf32> to vector<2x8x8xf32>
    %115 = arith.addf %112, %114 : vector<2x8x8xf32>
    %cst_41 = arith.constant dense<0xFF800000> : vector<2x8xf32>
    %116 = vector.multi_reduction <maximumf>, %115, %cst_41 [2] : vector<2x8x8xf32> to vector<2x8xf32>
    %117 = vector.shape_cast %116 : vector<2x8xf32> to vector<2x8x1xf32>
    %118 = vector.broadcast %117 : vector<2x8x1xf32> to vector<2x8x8xf32>
    %119 = arith.subf %115, %118 : vector<2x8x8xf32>
    %120 = math.exp %119 : vector<2x8x8xf32>
    %cst_42 = arith.constant dense<0.000000e+00> : vector<2x8xf32>
    %121 = vector.multi_reduction <add>, %120, %cst_42 [2] : vector<2x8x8xf32> to vector<2x8xf32>
    %122 = vector.shape_cast %121 : vector<2x8xf32> to vector<2x8x1xf32>
    %123 = tpu.reciprocal %122 {approx = true} : vector<2x8x1xf32> -> vector<2x8x1xf32>
    %124 = vector.broadcast %123 : vector<2x8x1xf32> to vector<2x8x8xf32>
    %125 = arith.mulf %120, %124 : vector<2x8x8xf32>
    %126 = arith.truncf %125 : vector<2x8x8xf32> to vector<2x8x8xbf16>
    "tpu.trace_start"() <{level = 10 : i32, message = "bqk,bkd->bqd"}> : () -> ()
    %cst_43 = arith.constant dense<0.000000e+00> : vector<2x8x8xf32>
    %127 = tpu.matmul %126, %109, %cst_43 {dimension_numbers = #tpu.dot_dimension_numbers<[2], [1], [1], [2], [0, 0, 0, 1, 1, 2], [0], [0]>} : vector<2x8x8xbf16>, vector<2x8x8xbf16>, vector<2x8x8xf32> -> vector<2x8x8xf32>
    "tpu.trace_stop"() : () -> ()
    %c0_44 = arith.constant 0 : index
    %c0_45 = arith.constant 0 : index
    %c16 = arith.constant 16 : index
    %128 = vector.load %arg22[%c0_44, %c0_45, %c16] : memref<2x8x32xf32, #tpu.memory_space<vmem>>, vector<2x8x8xf32>
    tpu.vector_store %arg22[%c0_44, %c0_45, %c16], %127 {strides = array<i32>} : memref<2x8x32xf32, #tpu.memory_space<vmem>>, vector<2x8x8xf32>,
    %129 = vector.extract_strided_slice %48 {offsets = [0, 0, 24], sizes = [2, 8, 8], strides = [1, 1, 1]} : vector<2x8x32xf32> to vector<2x8x8xf32>
    %130 = arith.truncf %129 : vector<2x8x8xf32> to vector<2x8x8xbf16>
    %131 = vector.extract_strided_slice %50 {offsets = [0, 0, 24], sizes = [2, 8, 8], strides = [1, 1, 1]} : vector<2x8x32xf32> to vector<2x8x8xf32>
    %132 = arith.truncf %131 : vector<2x8x8xf32> to vector<2x8x8xbf16>
    %133 = vector.extract_strided_slice %52 {offsets = [0, 0, 24], sizes = [2, 8, 8], strides = [1, 1, 1]} : vector<2x8x32xf32> to vector<2x8x8xf32>
    %134 = arith.truncf %133 : vector<2x8x8xf32> to vector<2x8x8xbf16>
    "tpu.trace_start"() <{level = 10 : i32, message = "bqd,bkd->bqk"}> : () -> ()
    %cst_46 = arith.constant dense<0.000000e+00> : vector<2x8x8xf32>
    %135 = tpu.matmul %130, %132, %cst_46 {dimension_numbers = #tpu.dot_dimension_numbers<[2], [2], [1], [1], [0, 0, 0, 1, 1, 1], [0], [0]>} : vector<2x8x8xbf16>, vector<2x8x8xbf16>, vector<2x8x8xf32> -> vector<2x8x8xf32>
    "tpu.trace_stop"() : () -> ()
    %cst_47 = arith.constant 0.353553385 : f32
    %136 = vector.broadcast %cst_47 : f32 to vector<2x8x8xf32>
    %137 = arith.mulf %135, %136 : vector<2x8x8xf32>
    %138 = vector.shape_cast %53 : vector<8x8xf32> to vector<1x8x8xf32>
    %139 = vector.broadcast %138 : vector<1x8x8xf32> to vector<2x8x8xf32>
    %140 = arith.addf %137, %139 : vector<2x8x8xf32>
    %cst_48 = arith.constant dense<0xFF800000> : vector<2x8xf32>
    %141 = vector.multi_reduction <maximumf>, %140, %cst_48 [2] : vector<2x8x8xf32> to vector<2x8xf32>
    %142 = vector.shape_cast %141 : vector<2x8xf32> to vector<2x8x1xf32>
    %143 = vector.broadcast %142 : vector<2x8x1xf32> to vector<2x8x8xf32>
    %144 = arith.subf %140, %143 : vector<2x8x8xf32>
    %145 = math.exp %144 : vector<2x8x8xf32>
    %cst_49 = arith.constant dense<0.000000e+00> : vector<2x8xf32>
    %146 = vector.multi_reduction <add>, %145, %cst_49 [2] : vector<2x8x8xf32> to vector<2x8xf32>
    %147 = vector.shape_cast %146 : vector<2x8xf32> to vector<2x8x1xf32>
    %148 = tpu.reciprocal %147 {approx = true} : vector<2x8x1xf32> -> vector<2x8x1xf32>
    %149 = vector.broadcast %148 : vector<2x8x1xf32> to vector<2x8x8xf32>
    %150 = arith.mulf %145, %149 : vector<2x8x8xf32>
    %151 = arith.truncf %150 : vector<2x8x8xf32> to vector<2x8x8xbf16>
    "tpu.trace_start"() <{level = 10 : i32, message = "bqk,bkd->bqd"}> : () -> ()
    %cst_50 = arith.constant dense<0.000000e+00> : vector<2x8x8xf32>
    %152 = tpu.matmul %151, %134, %cst_50 {dimension_numbers = #tpu.dot_dimension_numbers<[2], [1], [1], [2], [0, 0, 0, 1, 1, 2], [0], [0]>} : vector<2x8x8xbf16>, vector<2x8x8xbf16>, vector<2x8x8xf32> -> vector<2x8x8xf32>
    "tpu.trace_stop"() : () -> ()
    %c0_51 = arith.constant 0 : index
    %c0_52 = arith.constant 0 : index
    %c24 = arith.constant 24 : index
    %153 = vector.load %arg22[%c0_51, %c0_52, %c24] : memref<2x8x32xf32, #tpu.memory_space<vmem>>, vector<2x8x8xf32>
    tpu.vector_store %arg22[%c0_51, %c0_52, %c24], %152 {strides = array<i32>} : memref<2x8x32xf32, #tpu.memory_space<vmem>>, vector<2x8x8xf32>,
    %c0_53 = arith.constant 0 : index
    %c0_54 = arith.constant 0 : index
    %c0_55 = arith.constant 0 : index
    %154 = vector.load %arg22[%c0_53, %c0_54, %c0_55] : memref<2x8x32xf32, #tpu.memory_space<vmem>>, vector<2x8x32xf32>
    %155 = vector.shape_cast %154 : vector<2x8x32xf32> to vector<16x32xf32>
    %156 = arith.truncf %155 : vector<16x32xf32> to vector<16x32xbf16>
    %c0_56 = arith.constant 0 : index
    %c0_57 = arith.constant 0 : index
    %c0_58 = arith.constant 0 : index
    %157 = vector.load %arg8[%c0_56, %c0_57, %c0_58] : memref<1x32x32xbf16, #tpu.memory_space<vmem>>, vector<1x32x32xbf16>
    %158 = vector.shape_cast %157 : vector<1x32x32xbf16> to vector<32x32xbf16>
    %cst_59 = arith.constant dense<0.000000e+00> : vector<16x32xf32>
    %159 = tpu.matmul %156, %158, %cst_59 {dimension_numbers = #tpu.dot_dimension_numbers<[1], [0], [0], [1], [0, 0, 1, 1], [], []>} : vector<16x32xbf16>, vector<32x32xbf16>, vector<16x32xf32> -> vector<16x32xf32>
    %160 = arith.addf %9, %159 : vector<16x32xf32>
    %c0_60 = arith.constant 0 : index
    %c0_61 = arith.constant 0 : index
    %c0_62 = arith.constant 0 : index
    %161 = vector.load %arg9[%c0_60, %c0_61, %c0_62] : memref<1x1x32xf32, #tpu.memory_space<vmem>>, vector<1x1x32xf32>
    %162 = vector.shape_cast %161 : vector<1x1x32xf32> to vector<32xf32>
    %163 = vector.shape_cast %162 : vector<32xf32> to vector<1x32xf32>
    %164 = vector.broadcast %163 : vector<1x32xf32> to vector<16x32xf32>
    %165 = arith.addf %160, %164 : vector<16x32xf32>
    %c0_63 = arith.constant 0 : index
    %c0_64 = arith.constant 0 : index
    %c0_65 = arith.constant 0 : index
    %166 = vector.load %arg10[%c0_63, %c0_64, %c0_65] : memref<1x1x32xf32, #tpu.memory_space<vmem>>, vector<1x1x32xf32>
    %167 = vector.shape_cast %166 : vector<1x1x32xf32> to vector<32xf32>
    %c0_66 = arith.constant 0 : index
    %c0_67 = arith.constant 0 : index
    %c0_68 = arith.constant 0 : index
    %168 = vector.load %arg11[%c0_66, %c0_67, %c0_68] : memref<1x1x32xf32, #tpu.memory_space<vmem>>, vector<1x1x32xf32>
    %169 = vector.shape_cast %168 : vector<1x1x32xf32> to vector<32xf32>
    %cst_69 = arith.constant dense<0.000000e+00> : vector<16xf32>
    %170 = vector.multi_reduction <add>, %165, %cst_69 [1] : vector<16x32xf32> to vector<16xf32>
    %171 = vector.shape_cast %170 : vector<16xf32> to vector<16x1xf32>
    %cst_70 = arith.constant 3.200000e+01 : f32
    %172 = vector.broadcast %cst_70 : f32 to vector<16x1xf32>
    %173 = arith.divf %171, %172 : vector<16x1xf32>
    %174 = vector.broadcast %173 : vector<16x1xf32> to vector<16x32xf32>
    %175 = arith.subf %165, %174 : vector<16x32xf32>
    %176 = arith.mulf %175, %175 : vector<16x32xf32>
    %cst_71 = arith.constant dense<0.000000e+00> : vector<16xf32>
    %177 = vector.multi_reduction <add>, %176, %cst_71 [1] : vector<16x32xf32> to vector<16xf32>
    %178 = vector.shape_cast %177 : vector<16xf32> to vector<16x1xf32>
    %cst_72 = arith.constant 3.200000e+01 : f32
    %179 = vector.broadcast %cst_72 : f32 to vector<16x1xf32>
    %180 = arith.divf %178, %179 : vector<16x1xf32>
    %181 = vector.broadcast %173 : vector<16x1xf32> to vector<16x32xf32>
    %182 = arith.subf %165, %181 : vector<16x32xf32>
    %cst_73 = arith.constant 9.99999974E-6 : f32
    %183 = vector.broadcast %cst_73 : f32 to vector<16x1xf32>
    %184 = arith.addf %180, %183 : vector<16x1xf32>
    %185 = math.rsqrt %184 : vector<16x1xf32>
    %186 = vector.broadcast %185 : vector<16x1xf32> to vector<16x32xf32>
    %187 = arith.mulf %182, %186 : vector<16x32xf32>
    %188 = vector.shape_cast %167 : vector<32xf32> to vector<1x32xf32>
    %189 = vector.broadcast %188 : vector<1x32xf32> to vector<16x32xf32>
    %190 = arith.mulf %187, %189 : vector<16x32xf32>
    %191 = vector.shape_cast %169 : vector<32xf32> to vector<1x32xf32>
    %192 = vector.broadcast %191 : vector<1x32xf32> to vector<16x32xf32>
    %193 = arith.addf %190, %192 : vector<16x32xf32>
    %194 = arith.truncf %193 : vector<16x32xf32> to vector<16x32xbf16>
    %c0_74 = arith.constant 0 : index
    %c0_75 = arith.constant 0 : index
    %c0_76 = arith.constant 0 : index
    %195 = vector.load %arg12[%c0_74, %c0_75, %c0_76] : memref<1x32x128xbf16, #tpu.memory_space<vmem>>, vector<1x32x128xbf16>
    %196 = vector.shape_cast %195 : vector<1x32x128xbf16> to vector<32x128xbf16>
    %cst_77 = arith.constant dense<0.000000e+00> : vector<16x128xf32>
    %197 = tpu.matmul %194, %196, %cst_77 {dimension_numbers = #tpu.dot_dimension_numbers<[1], [0], [0], [1], [0, 0, 1, 1], [], []>} : vector<16x32xbf16>, vector<32x128xbf16>, vector<16x128xf32> -> vector<16x128xf32>
    %c0_78 = arith.constant 0 : index
    %c0_79 = arith.constant 0 : index
    %c0_80 = arith.constant 0 : index
    %198 = vector.load %arg13[%c0_78, %c0_79, %c0_80] : memref<1x1x128xf32, #tpu.memory_space<vmem>>, vector<1x1x128xf32>
    %199 = vector.shape_cast %198 : vector<1x1x128xf32> to vector<128xf32>
    %200 = vector.shape_cast %199 : vector<128xf32> to vector<1x128xf32>
    %201 = vector.broadcast %200 : vector<1x128xf32> to vector<16x128xf32>
    %202 = arith.addf %197, %201 : vector<16x128xf32>
    %cst_81 = arith.constant 1.702000e+00 : f32
    %203 = vector.broadcast %cst_81 : f32 to vector<16x128xf32>
    %204 = arith.mulf %203, %202 : vector<16x128xf32>
    %205 = arith.negf %204 : vector<16x128xf32>
    %206 = math.exp %205 : vector<16x128xf32>
    %cst_82 = arith.constant 1.000000e+00 : f32
    %207 = vector.broadcast %cst_82 : f32 to vector<16x128xf32>
    %208 = arith.addf %207, %206 : vector<16x128xf32>
    %209 = arith.divf %207, %208 : vector<16x128xf32>
    %210 = arith.mulf %202, %209 : vector<16x128xf32>
    %211 = arith.truncf %210 : vector<16x128xf32> to vector<16x128xbf16>
    %c0_83 = arith.constant 0 : index
    %c0_84 = arith.constant 0 : index
    %c0_85 = arith.constant 0 : index
    %212 = vector.load %arg14[%c0_83, %c0_84, %c0_85] : memref<1x128x32xbf16, #tpu.memory_space<vmem>>, vector<1x128x32xbf16>
    %213 = vector.shape_cast %212 : vector<1x128x32xbf16> to vector<128x32xbf16>
    %cst_86 = arith.constant dense<0.000000e+00> : vector<16x32xf32>
    %214 = tpu.matmul %211, %213, %cst_86 {dimension_numbers = #tpu.dot_dimension_numbers<[1], [0], [0], [1], [0, 0, 1, 1], [], []>} : vector<16x128xbf16>, vector<128x32xbf16>, vector<16x32xf32> -> vector<16x32xf32>
    %c0_87 = arith.constant 0 : index
    %c0_88 = arith.constant 0 : index
    %c0_89 = arith.constant 0 : index
    %215 = vector.load %arg15[%c0_87, %c0_88, %c0_89] : memref<1x1x32xf32, #tpu.memory_space<vmem>>, vector<1x1x32xf32>
    %216 = vector.shape_cast %215 : vector<1x1x32xf32> to vector<32xf32>
    %217 = vector.shape_cast %216 : vector<32xf32> to vector<1x32xf32>
    %218 = vector.broadcast %217 : vector<1x32xf32> to vector<16x32xf32>
    %219 = arith.addf %214, %218 : vector<16x32xf32>
    %220 = arith.addf %165, %219 : vector<16x32xf32>
    %221 = vector.shape_cast %220 : vector<16x32xf32> to vector<2x8x32xf32>
    %c0_90 = arith.constant 0 : index
    %c0_91 = arith.constant 0 : index
    %c0_92 = arith.constant 0 : index
    %222 = vector.load %arg21[%c0_90, %c0_91, %c0_92] : memref<2x8x32xf32, #tpu.memory_space<vmem>>, vector<2x8x32xf32>
    tpu.vector_store %arg21[%c0_90, %c0_91, %c0_92], %221 {strides = array<i32>} : memref<2x8x32xf32, #tpu.memory_space<vmem>>, vector<2x8x32xf32>,
    %c1_i32_93 = arith.constant 1 : i32
    %223 = arith.cmpi eq, %arg1, %c1_i32_93 : i32
    %224 = arith.extui %223 : i1 to i32
    %c0_i32_94 = arith.constant 0 : i32
    %225 = arith.cmpi ne, %224, %c0_i32_94 : i32
    scf.if %225 {
      %226 = vector.shape_cast %220 : vector<16x32xf32> to vector<2x8x32xf32>
      %227 = tpu.iota {dimensions = array<i32: 1>} : vector<2x8xi32>
      %c0_95 = arith.constant 0 : index
      %c0_96 = arith.constant 0 : index
      %228 = vector.load %arg3[%c0_95, %c0_96] : memref<2x1xi32, #tpu.memory_space<vmem>>, vector<2x1xi32>
      %229 = vector.broadcast %228 : vector<2x1xi32> to vector<2x8xi32>
      %230 = arith.cmpi eq, %227, %229 : vector<2x8xi32>
      %231 = arith.extui %230 : vector<2x8xi1> to vector<2x8xi32>
      %232 = arith.sitofp %231 : vector<2x8xi32> to vector<2x8xf32>
      %233 = vector.shape_cast %232 : vector<2x8xf32> to vector<2x8x1xf32>
      %234 = vector.broadcast %233 : vector<2x8x1xf32> to vector<2x8x32xf32>
      %235 = arith.mulf %226, %234 : vector<2x8x32xf32>
      %cst_97 = arith.constant dense<0.000000e+00> : vector<2x32xf32>
      %236 = vector.multi_reduction <add>, %235, %cst_97 [1] : vector<2x8x32xf32> to vector<2x32xf32>
      %c0_98 = arith.constant 0 : index
      %c0_99 = arith.constant 0 : index
      %237 = vector.load %arg17[%c0_98, %c0_99] : memref<1x32xf32, #tpu.memory_space<vmem>>, vector<1x32xf32>
      %238 = vector.shape_cast %237 : vector<1x32xf32> to vector<32xf32>
      %c0_100 = arith.constant 0 : index
      %c0_101 = arith.constant 0 : index
      %239 = vector.load %arg18[%c0_100, %c0_101] : memref<1x32xf32, #tpu.memory_space<vmem>>, vector<1x32xf32>
      %240 = vector.shape_cast %239 : vector<1x32xf32> to vector<32xf32>
      %cst_102 = arith.constant dense<0.000000e+00> : vector<2xf32>
      %241 = vector.multi_reduction <add>, %236, %cst_102 [1] : vector<2x32xf32> to vector<2xf32>
      %242 = vector.shape_cast %241 : vector<2xf32> to vector<2x1xf32>
      %cst_103 = arith.constant 3.200000e+01 : f32
      %243 = vector.broadcast %cst_103 : f32 to vector<2x1xf32>
      %244 = arith.divf %242, %243 : vector<2x1xf32>
      %245 = vector.broadcast %244 : vector<2x1xf32> to vector<2x32xf32>
      %246 = arith.subf %236, %245 : vector<2x32xf32>
      %247 = arith.mulf %246, %246 : vector<2x32xf32>
      %cst_104 = arith.constant dense<0.000000e+00> : vector<2xf32>
      %248 = vector.multi_reduction <add>, %247, %cst_104 [1] : vector<2x32xf32> to vector<2xf32>
      %249 = vector.shape_cast %248 : vector<2xf32> to vector<2x1xf32>
      %cst_105 = arith.constant 3.200000e+01 : f32
      %250 = vector.broadcast %cst_105 : f32 to vector<2x1xf32>
      %251 = arith.divf %249, %250 : vector<2x1xf32>
      %252 = vector.broadcast %244 : vector<2x1xf32> to vector<2x32xf32>
      %253 = arith.subf %236, %252 : vector<2x32xf32>
      %cst_106 = arith.constant 9.99999974E-6 : f32
      %254 = vector.broadcast %cst_106 : f32 to vector<2x1xf32>
      %255 = arith.addf %251, %254 : vector<2x1xf32>
      %256 = math.rsqrt %255 : vector<2x1xf32>
      %257 = vector.broadcast %256 : vector<2x1xf32> to vector<2x32xf32>
      %258 = arith.mulf %253, %257 : vector<2x32xf32>
      %259 = vector.shape_cast %238 : vector<32xf32> to vector<1x32xf32>
      %260 = vector.broadcast %259 : vector<1x32xf32> to vector<2x32xf32>
      %261 = arith.mulf %258, %260 : vector<2x32xf32>
      %262 = vector.shape_cast %240 : vector<32xf32> to vector<1x32xf32>
      %263 = vector.broadcast %262 : vector<1x32xf32> to vector<2x32xf32>
      %264 = arith.addf %261, %263 : vector<2x32xf32>
      %265 = arith.truncf %264 : vector<2x32xf32> to vector<2x32xbf16>
      %c0_107 = arith.constant 0 : index
      %c0_108 = arith.constant 0 : index
      %266 = vector.load %arg19[%c0_107, %c0_108] : memref<32x16xbf16, #tpu.memory_space<vmem>>, vector<32x16xbf16>
      %cst_109 = arith.constant dense<0.000000e+00> : vector<2x16xf32>
      %267 = tpu.matmul %265, %266, %cst_109 {dimension_numbers = #tpu.dot_dimension_numbers<[1], [0], [0], [1], [0, 0, 1, 1], [], []>} : vector<2x32xbf16>, vector<32x16xbf16>, vector<2x16xf32> -> vector<2x16xf32>
      %c0_110 = arith.constant 0 : index
      %c0_111 = arith.constant 0 : index
      %268 = vector.load %arg20[%c0_110, %c0_111] : memref<2x16xf32, #tpu.memory_space<vmem>>, vector<2x16xf32>
      tpu.vector_store %arg20[%c0_110, %c0_111], %267 {strides = array<i32>} : memref<2x16xf32, #tpu.memory_space<vmem>>, vector<2x16xf32>,
    } else {
    }
    return
  }
  func.func @transform_0(%arg0: i32, %arg1: i32) -> (i32, i32, i32) {
    %c0_i32 = arith.constant 0 : i32
    %c0_i32_0 = arith.constant 0 : i32
    %c0_i32_1 = arith.constant 0 : i32
    return %arg0, %c0_i32, %c0_i32_0 : i32, i32, i32
  }
  func.func @transform_1(%arg0: i32, %arg1: i32) -> (i32, i32) {
    %c0_i32 = arith.constant 0 : i32
    %c0_i32_0 = arith.constant 0 : i32
    return %arg0, %c0_i32 : i32, i32
  }
  func.func @transform_2(%arg0: i32, %arg1: i32) -> (i32, i32, i32) {
    %c0_i32 = arith.constant 0 : i32
    %c0_i32_0 = arith.constant 0 : i32
    %c0_i32_1 = arith.constant 0 : i32
    return %arg1, %c0_i32, %c0_i32_0 : i32, i32, i32
  }
  func.func @transform_3(%arg0: i32, %arg1: i32) -> (i32, i32, i32) {
    %c0_i32 = arith.constant 0 : i32
    %c0_i32_0 = arith.constant 0 : i32
    %c0_i32_1 = arith.constant 0 : i32
    return %arg1, %c0_i32, %c0_i32_0 : i32, i32, i32
  }
  func.func @transform_4(%arg0: i32, %arg1: i32) -> (i32, i32, i32) {
    %c0_i32 = arith.constant 0 : i32
    %c0_i32_0 = arith.constant 0 : i32
    %c0_i32_1 = arith.constant 0 : i32
    return %arg1, %c0_i32, %c0_i32_0 : i32, i32, i32
  }
  func.func @transform_5(%arg0: i32, %arg1: i32) -> (i32, i32, i32) {
    %c0_i32 = arith.constant 0 : i32
    %c0_i32_0 = arith.constant 0 : i32
    %c0_i32_1 = arith.constant 0 : i32
    return %arg1, %c0_i32, %c0_i32_0 : i32, i32, i32
  }
  func.func @transform_6(%arg0: i32, %arg1: i32) -> (i32, i32, i32) {
    %c0_i32 = arith.constant 0 : i32
    %c0_i32_0 = arith.constant 0 : i32
    %c0_i32_1 = arith.constant 0 : i32
    return %arg1, %c0_i32, %c0_i32_0 : i32, i32, i32
  }
  func.func @transform_7(%arg0: i32, %arg1: i32) -> (i32, i32, i32) {
    %c0_i32 = arith.constant 0 : i32
    %c0_i32_0 = arith.constant 0 : i32
    %c0_i32_1 = arith.constant 0 : i32
    return %arg1, %c0_i32, %c0_i32_0 : i32, i32, i32
  }
  func.func @transform_8(%arg0: i32, %arg1: i32) -> (i32, i32, i32) {
    %c0_i32 = arith.constant 0 : i32
    %c0_i32_0 = arith.constant 0 : i32
    %c0_i32_1 = arith.constant 0 : i32
    return %arg1, %c0_i32, %c0_i32_0 : i32, i32, i32
  }
  func.func @transform_9(%arg0: i32, %arg1: i32) -> (i32, i32, i32) {
    %c0_i32 = arith.constant 0 : i32
    %c0_i32_0 = arith.constant 0 : i32
    %c0_i32_1 = arith.constant 0 : i32
    return %arg1, %c0_i32, %c0_i32_0 : i32, i32, i32
  }
  func.func @transform_10(%arg0: i32, %arg1: i32) -> (i32, i32, i32) {
    %c0_i32 = arith.constant 0 : i32
    %c0_i32_0 = arith.constant 0 : i32
    %c0_i32_1 = arith.constant 0 : i32
    return %arg1, %c0_i32, %c0_i32_0 : i32, i32, i32
  }
  func.func @transform_11(%arg0: i32, %arg1: i32) -> (i32, i32, i32) {
    %c0_i32 = arith.constant 0 : i32
    %c0_i32_0 = arith.constant 0 : i32
    %c0_i32_1 = arith.constant 0 : i32
    return %arg1, %c0_i32, %c0_i32_0 : i32, i32, i32
  }
  func.func @transform_12(%arg0: i32, %arg1: i32) -> (i32, i32, i32) {
    %c0_i32 = arith.constant 0 : i32
    %c0_i32_0 = arith.constant 0 : i32
    %c0_i32_1 = arith.constant 0 : i32
    return %arg1, %c0_i32, %c0_i32_0 : i32, i32, i32
  }
  func.func @transform_13(%arg0: i32, %arg1: i32) -> (i32, i32, i32) {
    %c0_i32 = arith.constant 0 : i32
    %c0_i32_0 = arith.constant 0 : i32
    %c0_i32_1 = arith.constant 0 : i32
    return %arg1, %c0_i32, %c0_i32_0 : i32, i32, i32
  }
  func.func @transform_14(%arg0: i32, %arg1: i32) -> (i32, i32, i32) {
    %c0_i32 = arith.constant 0 : i32
    %c0_i32_0 = arith.constant 0 : i32
    %c0_i32_1 = arith.constant 0 : i32
    %c0_i32_2 = arith.constant 0 : i32
    return %c0_i32, %c0_i32_0, %c0_i32_1 : i32, i32, i32
  }
  func.func @transform_15(%arg0: i32, %arg1: i32) -> (i32, i32) {
    %c0_i32 = arith.constant 0 : i32
    %c0_i32_0 = arith.constant 0 : i32
    %c0_i32_1 = arith.constant 0 : i32
    return %c0_i32, %c0_i32_0 : i32, i32
  }
  func.func @transform_16(%arg0: i32, %arg1: i32) -> (i32, i32) {
    %c0_i32 = arith.constant 0 : i32
    %c0_i32_0 = arith.constant 0 : i32
    %c0_i32_1 = arith.constant 0 : i32
    return %c0_i32, %c0_i32_0 : i32, i32
  }
  func.func @transform_17(%arg0: i32, %arg1: i32) -> (i32, i32) {
    %c0_i32 = arith.constant 0 : i32
    %c0_i32_0 = arith.constant 0 : i32
    %c0_i32_1 = arith.constant 0 : i32
    return %c0_i32, %c0_i32_0 : i32, i32
  }
  func.func @transform_18(%arg0: i32, %arg1: i32) -> (i32, i32) {
    %c0_i32 = arith.constant 0 : i32
    %c0_i32_0 = arith.constant 0 : i32
    return %arg0, %c0_i32 : i32, i32
  }
}

</mosaic_0001>

<bundles_post_ra>
// kernel: tpu_custom_call.1
= control target key start
LH: loop header
LB: loop body
LE: loop exit
PB: predicated region body
PF: predicated region fallthrough
CT: control target
= control target key end

     0   :  { %s3536_s0 = inlined_call_operand.vmem [shape: f32[2,8,32], index: 0, kind: input, shape index: {}]   ;;  %s3537_s1 = inlined_call_operand.vmem [shape: s32[2,1], index: 1, kind: input, shape index: {}]   ;;  %s3538_s2 = inlined_call_operand.vmem [shape: f32[2,1,32], index: 2, kind: input, shape index: {}]   ;;  %s3539_s3 = inlined_call_operand.vmem [shape: f32[2,1,32], index: 3, kind: input, shape index: {}]   ;;  %s3540_s4 = inlined_call_operand.vmem [shape: bf16[2,32,96], index: 4, kind: input, shape index: {}]   ;;  %s3541_s5 = inlined_call_operand.vmem [shape: f32[2,1,96], index: 5, kind: input, shape index: {}]   ;;  %s3542_s6 = inlined_call_operand.vmem [shape: bf16[2,32,32], index: 6, kind: input, shape index: {}]   ;;  %s3543_s7 = inlined_call_operand.vmem [shape: f32[2,1,32], index: 7, kind: input, shape index: {}]   ;;  %s3544_s8 = inlined_call_operand.vmem [shape: f32[2,1,32], index: 8, kind: input, shape index: {}]   ;;  %s3545_s9 = inlined_call_operand.vmem [shape: f32[2,1,32], index: 9, kind: input, shape index: {}]   ;;  %s3546_s10 = inlined_call_operand.vmem [shape: bf16[2,32,128], index: 10, kind: input, shape index: {}]   ;;  %s3547_s11 = inlined_call_operand.vmem [shape: f32[2,1,128], index: 11, kind: input, shape index: {}]   ;;  %s3548_s12 = inlined_call_operand.vmem [shape: bf16[2,128,32], index: 12, kind: input, shape index: {}]   ;;  %s3549_s13 = inlined_call_operand.vmem [shape: f32[2,1,32], index: 13, kind: input, shape index: {}]   ;;  %s3550_s14 = inlined_call_operand.vmem [shape: f32[1,8,32], index: 14, kind: input, shape index: {}]   ;;  %s3551_s15 = inlined_call_operand.vmem [shape: f32[1,32], index: 15, kind: input, shape index: {}]   ;;  %s3552_s16 = inlined_call_operand.vmem [shape: f32[1,32], index: 16, kind: input, shape index: {}]   ;;  %s3553_s17 = inlined_call_operand.vmem [shape: bf16[32,16], index: 17, kind: input, shape index: {}]   ;;  %s3554_s18 = inlined_call_operand.hbm [shape: f32[2,16], index: 18, kind: output, shape index: {}]  }
   0x1   :  { %3560 = sst [smem:[#allocation11_spill]] %s3536_s0 }
   0x2   :  { %3561 = sst [smem:[#allocation12_spill]] %s3537_s1 }
   0x3   :  { %3562 = sst [smem:[#allocation13_spill]] %s3538_s2 }
   0x4   :  { %3563 = sst [smem:[#allocation14_spill]] %s3540_s4 }
   0x5   :  { %3564 = sst [smem:[#allocation15_spill]] %s3542_s6 }
   0x6   :  { %3565 = sst [smem:[#allocation16_spill]] %s3551_s15 }
   0x7   :  { %3566 = sst [smem:[#allocation17_spill]] %s3552_s16 }
   0x8   :  { %3567 = sst [smem:[#allocation18_spill]] %s3553_s17 }
   0x9   :  { %3568 = sst [smem:[#allocation19_spill]] %s3554_s18 }
   0xa   :  { %23 = vsyncpa [#allocation6], 0  ;;  %s3130_s27 = smov 0   ;;  %s3132_s28 = smov 0  }
   0xb   :  { %s3134_s29 = smov 0  }
   0xc LB: > { %3569 = sst [smem:[#allocation8_spill]] %s3008_s28  ;;  %s38_s0 = sadd.s32 1, %s3008_s28  ;;  %s3012_s29 = sphi %s3134_s29, %s29_s29   ;;  %s3008_s28 = sphi %s3132_s28, %s3591_s28   ;;  %s3004_s27 = sphi %s3130_s27, %s3590_s27  }
   0xd   : > { %3570 = sst [smem:[#allocation9_spill]] %s3012_s29  ;;  %p39_p0 = scmp.ge.s32.totalorder %s38_s0, 2 }
   0xe   : > { %p2571_p1 = scmp.ge.s32.totalorder %s3012_s29, 1  ;;  %p639_p2 = scmp.lt.s32.totalorder %s3012_s29, 3 }
   0xf   : > { %s3593_s0 = smov (%p39_p0, %s38_s0), 0 }
  0x10   : > { %3571 = sst [smem:[#allocation10_spill]] %s3593_s0  ;;  %p640_p3 = pnand %p2571_p1, %p639_p2 }
  0x11   : > { %p746_p4 = scmp.lt.s32.totalorder (!%p640_p3), %s3004_s27, 1  ;;  %s3573_s4 = sld [smem:[#allocation14_spill]] (!%p640_p3) }
  0x12   : > { %643 = sbr.rel (%p640_p3) target bundleno = 4926 (0x133e), region = 92  ;;  %s3574_s6 = sld [smem:[#allocation15_spill]] (!%p640_p3) }
  0x13   : > { %p2580_p5 = scmp.ne.s32.totalorder (!%p640_p3), %s3004_s27, 0 }
  0x19   : > { %s3153_s19 = scalar_select %p746_p4, %s3004_s27, 1 }
  0x1a   : > { %794 = sbr.rel (%p2580_p5) target bundleno = 34 (0x22), region = 96  ;;  %s3575_s1 = sld [smem:[#allocation11_spill]] (!%p2580_p5)  ;;  %vm797_vm0 = vcmask (!%p2580_p5), 261120   ;;  %v800_v2 = vlaneseq (!%p2580_p5)  ;;  %vm806_vm1 = vcmask (!%p2580_p5), 64512   ;;  %v3014_v5 = vmov (!%p2580_p5), -1e+30  }
  0x1b   : > { %s2637_s25 = sshll.u32 %s3153_s19, 4  ;;  %s770_s15 = scalar_lea.vmem %s3544_s8, %s3153_s19 }
  0x1c   : > { %s3171_s28 = scalar_lea.vmem %s3573_s4, %s2637_s25  ;;  %s3176_s16 = scalar_lea.vmem %s3574_s6, %s2637_s25  ;;  %v801_v3 = vshrl.u32 (!%p2580_p5), %v800_v2, 7  ;;  %v803_v4 = vand.u32 (!%p2580_p5), 127, %v800_v2 }
  0x1d   : > { %s773_s0 = scalar_lea.vmem %s3545_s9, %s3153_s19  ;;  %s3193_s4 = scalar_lea.vmem %s3546_s10, %s2637_s25 }
  0x1e   : > { %s781_s6 = scalar_lea.vmem %s3547_s11, %s3153_s19  ;;  %s2640_s17 = sshll.u32 %s3153_s19, 6  ;;  %vm804_vm2 = vcmp.le.s32.totalorder (!%p2580_p5), %v803_v4, %v801_v3 }
  0x1f   : > { %s3203_s2 = scalar_lea.vmem %s3548_s12, %s2640_s17  ;;  %s789_s30 = scalar_lea.vmem %s3549_s13, %s3153_s19  ;;  %v805_v6 = vsel (!%p2580_p5), %vm804_vm2, 0.0, %v3014_v5 }
  0x20   : > { %v795_v0 = vld [vmem:[%s3575_s1] sm:$0xff] (!%p2580_p5)  ;;  %v796_v1 = vld [vmem:[%s3575_s1 + $0x8] sm:$0xff] (!%p2580_p5)  ;;  %807 = vst.msk [vmem:[#allocation4] sm:$0xff] (!%p2580_p5), %vm806_vm1, %v805_v6 }
  0x21   : > { %798 = vst.msk [vmem:[#allocation2] sm:$0xff] %vm797_vm0, %v795_v0  ;;  %799 = vst.msk [vmem:[#allocation2 + $0x8] sm:$0xff] %vm797_vm0, %v796_v1 }
  0x22 PF: > { %p808_p6 = scmp.ge.s32.totalorder %s3004_s27, 1  ;;  %p809_p7 = scmp.le.s32.totalorder %s3004_s27, 1 }
  0x24   : > { %p810_p8 = pnand %p809_p7, %p808_p6 }
  0x25   : > { %s2581_s17 = sadd.s32 (!%p810_p8), 4294967295, %s3004_s27  ;;  %v818_v7 = vlaneseq (!%p810_p8)  ;;  %vm829_vm5 = vcmask (!%p810_p8), 261120  }
  0x26   : > { %813 = sbr.rel (%p810_p8) target bundleno = 45 (0x2d), region = 100  ;;  %s2582_s29 = sshll.u32 (!%p810_p8), %s2581_s17, 3 }
  0x27   : > { %s816_s24 = scalar_lea.vmem (!%p810_p8), %s3550_s14, %s2582_s29  ;;  %v819_v8 = vshrl.u32 (!%p810_p8), %v818_v7, 7 }
  0x28   : > { %v817_v9 = vld [vmem:[%s816_s24] sm:$0xff] (!%p810_p8)  ;;  %v824_v11 = vld [vmem:[#allocation2 + $0x8] sm:$0xff] (!%p810_p8) }
  0x29   : > { %v823_v10 = vld [vmem:[#allocation2] sm:$0xff] (!%p810_p8)  ;;  %vm820_vm3 = vcmp.lt.s32.totalorder (!%p810_p8), %v819_v8, 1  ;;  %vm821_vm4 = vcmp.gt.s32.totalorder (!%p810_p8), %v819_v8, 2 }
  0x2a   : > { %vm822_vm6 = vmor (!%p810_p8), %vm820_vm3, %vm821_vm4 }
  0x2b   : > { %v827_v12 = vsel (!%p810_p8), %vm822_vm6, %v823_v10, %v817_v9  ;;  %v828_v13 = vsel (!%p810_p8), %vm822_vm6, %v824_v11, %v817_v9 }
  0x2c   : > { %830 = vst.msk [vmem:[#allocation2] sm:$0xff] (!%p810_p8), %vm829_vm5, %v827_v12  ;;  %831 = vst.msk [vmem:[#allocation2 + $0x8] sm:$0xff] (!%p810_p8), %vm829_vm5, %v828_v13 }
  0x2d PF: > { %vm836_vm7 = vcmask 261120   ;;  %v2893_v28 = vld [vmem:[%s3171_s28] sm:$0xff]   ;;  %v3015_v29 = vmov 0.0   ;;  %v2894_v30 = vld [vmem:[%s3171_s28 + $0x8] sm:$0xff]   ;;  %vm3016_vm8 = vmmov 0   ;;  %s3576_s26 = sld [smem:[#allocation13_spill]]  ;;  %s3578_s17 = scalar_lea.vmem %s3539_s3, %s3153_s19 }
  0x2e   : > { %2694 = vmatprep.subr.bf16.mxu0 %v3015_v29  ;;  %2714 = vmatprep.subr.bf16.mxu1 %v3015_v29  ;;  %v2584_v43 = vld [vmem:[%s3578_s17] ss:$0 sm:$0xff]  ;;  %s3579_s21 = scalar_lea.vmem %s3541_s5, %s3153_s19  ;;  %s3017_s24 = smov 96   ;;  %vm954_vm9 = vcmask 64512   ;;  %vm1083_vm10 = vcmask 1043456   ;;  %vm1409_vm11 = vcmask 130112  }
  0x2f   : > { %2695 = vmatpush3.bf16.msra.mxu0 %v2893_v28  ;;  %2698 = vmatprep.mubr.msk.bf16.mxu0 %vm3016_vm8, %v3015_v29  ;;  %v2585_v48 = vld [vmem:[%s3579_s21] ss:$0 sm:$0xff]  ;;  %s3018_s28 = smov 64   ;;  %s3019_s23 = smov 88   ;;  %vm1644_vm12 = vcmask 195712   ;;  %vm1879_vm13 = vcmask 261312  }
  0x30   : > { %2696 = vmatprep.subr.bf16.mxu0 %v3015_v29  ;;  %2716 = vmatprep.mubr.msk.bf16.mxu1 %vm3016_vm8, %v3015_v29  ;;  %v3280_v62 = vld [vmem:[#allocation4] sm:$0xff]  ;;  %s3022_s20 = smov 80   ;;  %s3023_s18 = smov 112  }
  0x31   : > { %s3024_s17 = smov 48   ;;  %s3025_s29 = smov 72  }
  0x32   : > { %s3026_s22 = smov 104   ;;  %s3027_s21 = smov 40  }
  0x33   : > { %v3222_v14 = vld [vmem:[#allocation2] sm:$0xff]  ;;  %v3224_v15 = vld [vmem:[#allocation2 + $0x8] sm:$0xff]  ;;  %2697 = vmatpush3.bf16.msra.mxu0 %v2894_v30  ;;  %s3577_s25 = scalar_lea.vmem %s3576_s26, %s3153_s19  ;;  %s3020_s26 = smov 120  }
  0x34   : > { %v837_v16 = vsel %vm836_vm7, %v3222_v14, 0.0  ;;  %v840_v17 = vsel %vm836_vm7, %v3224_v15, 0.0  ;;  %2702 = vmatprep.subr.bf16.mxu0 %v3015_v29  ;;  %v2583_v39 = vld [vmem:[%s3577_s25] ss:$0 sm:$0xff]  ;;  %s3021_s25 = smov 56   ;;  %p2626_p9 = scmp.ne.s32.totalorder %s3004_s27, 1 }
  0x35   : > { %838 = vadd.xlane.f32.xlu0 %v837_v16  ;;  %vm2248_vm15 = vcmask (!%p2626_p9), 1041409   ;;  %vm2251_vm0 = vcmask (!%p2626_p9), 254976   ;;  %vm3033_vm1 = vmmov (!%p2626_p9), 0   ;;  %vm2365_vm2 = vcmask (!%p2626_p9), 123904  }
  0x39   : > { %841 = vadd.xlane.f32.xlu0 %v840_v17 }
  0xc2   : > { %v839_v18 = vpop.xlane.xlu0 %838 }
  0xc3   : > { %v844_v19 = vmul.f32 0.03125, %v839_v18 }
  0xc5   : > { %v846_v20 = vsub.f32 %v3222_v14, %v844_v19 }
  0xc6   : > { %v842_v21 = vpop.xlane.xlu0 %841 }
  0xc7   : > { %v845_v22 = vmul.f32 0.03125, %v842_v21  ;;  %v848_v23 = vmul.f32 %v846_v20, %v846_v20 }
  0xc9   : > { %v847_v24 = vsub.f32 %v3224_v15, %v845_v22  ;;  %v850_v25 = vsel %vm836_vm7, %v848_v23, 0.0 }
  0xca   : > { %851 = vadd.xlane.f32.xlu1 %v850_v25 }
  0xcb   : > { %v849_v26 = vmul.f32 %v847_v24, %v847_v24 }
  0xcd   : > { %v853_v27 = vsel %vm836_vm7, %v849_v26, 0.0 }
  0xce   : > { %854 = vadd.xlane.f32.xlu1 %v853_v27 }
 0x157   : > { %v852_v31 = vpop.xlane.xlu1 %851 }
 0x158   : > { %v856_v32 = vmul.f32 0.03125, %v852_v31 }
 0x15a   : > { %v858_v33 = vadd.f32 1e-05, %v856_v32 }
 0x15b   : > { %v855_v34 = vpop.xlane.xlu1 %854 }
 0x15c   : > { %2907 = vrsqrt.f32 %v858_v33  ;;  %v857_v35 = vmul.f32 0.03125, %v855_v34 }
 0x15e   : > { %v859_v36 = vadd.f32 1e-05, %v857_v35 }
 0x160   : > { %2909 = vrsqrt.f32 %v859_v36 }
 0x166   : > { %v2908_v37 = vpop.eup %2907 }
 0x167   : > { %v862_v38 = vmul.f32 %v2908_v37, %v846_v20 }
 0x169   : > { %v870_v42 = vmul.f32 %v2583_v39, %v862_v38 }
 0x16a   : > { %v2910_v40 = vpop.eup %2909 }
 0x16b   : > { %v863_v41 = vmul.f32 %v2910_v40, %v847_v24  ;;  %v878_v45 = vadd.f32 %v2584_v43, %v870_v42 }
 0x16d   : > { %v871_v44 = vmul.f32 %v2583_v39, %v863_v41 }
 0x16f   : > { %v879_v46 = vadd.f32 %v2584_v43, %v871_v44 }
 0x171   : > { %v880_v47 = vpack.c.bf16 %v879_v46, %v878_v45 }
 0x173   : > { %2699 = vmatmul.mubr.msk.bf16.vlgmr.msra.gmra.mrb[0].mxu0 %vm836_vm7, %v880_v47 }
 0x174   : > { %2704 = vmatprep.mubr.msk.bf16.mxu0 %vm3016_vm8, %v3015_v29 }
 0x246   : > { %v941_v49 = vpop.f32.mrb[0].mxu0 }
 0x247   : > { %v942_v50 = vadd.f32 %v2585_v48, %v941_v49  ;;  %v2700_v51 = vpop.f32.mrb[1].mxu0 }
 0x248   : > { %v944_v52 = vpop.f32.mrb[2].mxu0 }
 0x249   : > { %v3262_v53 = vpack.c.bf16 %v942_v50, %v942_v50  ;;  %v945_v54 = vadd.f32 %v2585_v48, %v944_v52  ;;  %v2701_v55 = vpop.f32.mrb[3].mxu0 }
 0x24b   : > { %v3264_v56 = vpack.c.bf16 %v945_v54, %v945_v54  ;;  %952 = vrot.lane.b32.xlu0 %v3262_v53, %s3017_s24 }
 0x24d   : > { %1002 = vrot.lane.b32.xlu1 %v3264_v56, %s3017_s24  ;;  %s3028_s24 = smov 8  }
 0x2bd   : > { %v953_v57 = vpop.permute.xlu0 %952 }
 0x2be   : > { %v959_v58 = vsel %vm954_vm9, %v953_v57, 0 }
 0x2bf   : > { %2703 = vmatpush3.bf16.xpose.msra.mxu0 %v959_v58  ;;  %v1003_v59 = vpop.permute.xlu1 %1002 }
 0x2c0   : > { %2708 = vmatprep.subr.bf16.mxu0 %v3015_v29  ;;  %v1008_v60 = vsel %vm954_vm9, %v1003_v59, 0 }
 0x2c6   : > { %2705 = vmatmul.mubr.msk.bf16.vlgmr.msra.gmra.mrb[4].mxu0 %vm954_vm9, %v3262_v53 }
 0x2c7   : > { %2709 = vmatpush3.bf16.xpose.msra.mxu0 %v1008_v60  ;;  %2710 = vmatprep.mubr.msk.bf16.mxu0 %vm3016_vm8, %v3015_v29 }
 0x2c8   : > { %2720 = vmatprep.subr.bf16.mxu0 %v3015_v29 }
 0x2ce   : > { %2711 = vmatmul.mubr.msk.bf16.vlgmr.msra.gmra.mrb[8].mxu0 %vm954_vm9, %v3264_v56 }
 0x2cf   : > { %2722 = vmatprep.mubr.msk.bf16.mxu0 %vm3016_vm8, %v3015_v29 }
 0x399   : > { %v995_v61 = vpop.f32.mrb[4].mxu0 }
 0x39a   : > { %v1050_v63 = vmul.f32 0.35355338, %v995_v61  ;;  %v2706_v0 = vpop.f32.mrb[5].mxu0 }
 0x39b   : > { %v998_v1 = vpop.f32.mrb[6].mxu0 }
 0x39c   : > { %v2707_v2 = vpop.f32.mrb[7].mxu0  ;;  %v1052_v3 = vadd.f32 %v1050_v63, %v3280_v62 }
 0x39e   : > { %v1054_v4 = vsel %vm954_vm9, %v1052_v3, -inf }
 0x39f   : > { %1055 = vmax.xlane.f32.xlu1 %v1054_v4 }
 0x3a1   : > { %v1044_v5 = vpop.f32.mrb[8].mxu0 }
 0x3a2   : > { %v1051_v6 = vmul.f32 0.35355338, %v1044_v5  ;;  %v2712_v7 = vpop.f32.mrb[9].mxu0 }
 0x3a3   : > { %v1047_v8 = vpop.f32.mrb[10].mxu0 }
 0x3a4   : > { %v2713_v9 = vpop.f32.mrb[11].mxu0  ;;  %v1053_v10 = vadd.f32 %v1051_v6, %v3280_v62 }
 0x3a6   : > { %v1057_v11 = vsel %vm954_vm9, %v1053_v10, -inf }
 0x3a7   : > { %1058 = vmax.xlane.f32.xlu0 %v1057_v11 }
 0x3b0   : > { %1127 = vrot.lane.b32.xlu1 %v3264_v56, %s3018_s28 }
 0x3b4   : > { %1179 = vrot.lane.b32.xlu1 %v3262_v53, %s3019_s23 }
 0x42c   : > { %v1056_v12 = vpop.xlane.xlu1 %1055 }
 0x42d   : > { %v1060_v13 = vsub.f32 %v1052_v3, %v1056_v12 }
 0x42f   : > { %v1062_v16 = vmul.f32 1.442695, %v1060_v13 }
 0x430   : > { %v1128_v17 = vpop.permute.xlu1 %1127 }
 0x431   : > { %2911 = vpow2.f32 %v1062_v16  ;;  %v1133_v18 = vsel %vm1083_vm10, %v1128_v17, 0 }
 0x432   : > { %2721 = vmatpush3.bf16.msra.mxu0 %v1133_v18 }
 0x433   : > { %2732 = vmatprep.subr.bf16.mxu0 %v3015_v29 }
 0x434   : > { %v1059_v19 = vpop.xlane.xlu0 %1058  ;;  %v1180_v27 = vpop.permute.xlu1 %1179 }
 0x435   : > { %v1061_v20 = vsub.f32 %v1053_v10, %v1059_v19  ;;  %v1185_v35 = vsel %vm954_vm9, %v1180_v27, 0 }
 0x437   : > { %v1064_v21 = vmul.f32 1.442695, %v1061_v20 }
 0x439   : > { %2913 = vpow2.f32 %v1064_v21 }
 0x43b   : > { %v2912_v22 = vpop.eup %2911 }
 0x43c   : > { %v1066_v23 = vsel %vm954_vm9, %v2912_v22, 0.0 }
 0x43d   : > { %1067 = vadd.xlane.f32.xlu0 %v1066_v23 }
 0x443   : > { %v2914_v24 = vpop.eup %2913 }
 0x444   : > { %v1069_v25 = vsel %vm954_vm9, %v2914_v24, 0.0 }
 0x445   : > { %1070 = vadd.xlane.f32.xlu1 %v1069_v25 }
 0x453   : > { %1078 = vrot.lane.b32.xlu0 %v3262_v53, %s3018_s28  ;;  %s3029_s28 = smov 16  }
 0x456   : > { %1229 = vrot.lane.b32.xlu1 %v3264_v56, %s3019_s23  ;;  %s3030_s23 = smov 24  }
 0x457   : > { %1177 = vrot.lane.b32.xlu0 %v3262_v53, %s3020_s26 }
 0x45a   : > { %1227 = vrot.lane.b32.xlu1 %v3264_v56, %s3020_s26  ;;  %s3583_s26 = sld [smem:[#allocation16_spill]] (!%p2626_p9) }
 0x4ca   : > { %v1068_v26 = vpop.xlane.xlu0 %1067 }
 0x4cb   : > { %2915 = vrcp.f32 %v1068_v26 }
 0x4ce   : > { %v1079_v28 = vpop.permute.xlu0 %1078 }
 0x4cf   : > { %v1085_v30 = vsel %vm1083_vm10, %v1079_v28, 0 }
 0x4d0   : > { %2715 = vmatpush3.bf16.msra.mxu1 %v1085_v30 }
 0x4d1   : > { %2726 = vmatprep.subr.bf16.mxu1 %v3015_v29 }
 0x4d2   : > { %v1071_v31 = vpop.xlane.xlu1 %1070  ;;  %v1178_v40 = vpop.permute.xlu0 %1177 }
 0x4d3   : > { %2917 = vrcp.f32 %v1071_v31 }
 0x4d5   : > { %v2916_v32 = vpop.eup %2915 }
 0x4d6   : > { %v1074_v33 = vmul.f32 %v2916_v32, %v2912_v22  ;;  %v1230_v38 = vpop.permute.xlu1 %1229 }
 0x4d7   : > { %v1235_v41 = vsel %vm954_vm9, %v1230_v38, 0 }
 0x4d8   : > { %v1076_v34 = vpack.c.bf16 %v1074_v33, %v1074_v33 }
 0x4da   : > { %2717 = vmatmul.mubr.msk.bf16.vlgmr.msra.gmra.mrb[0].mxu1 %vm954_vm9, %v1076_v34  ;;  %v1228_v42 = vpop.permute.xlu1 %1227 }
 0x4db   : > { %2727 = vmatpush3.bf16.xpose.msra.mxu1 %v1185_v35  ;;  %2728 = vmatprep.mubr.msk.bf16.mxu1 %vm3016_vm8, %v3015_v29 }
 0x4dc   : > { %2738 = vmatprep.subr.bf16.mxu1 %v3015_v29 }
 0x4dd   : > { %v2918_v36 = vpop.eup %2917 }
 0x4de   : > { %v1075_v37 = vmul.f32 %v2918_v36, %v2914_v24 }
 0x4e0   : > { %v1077_v39 = vpack.c.bf16 %v1075_v37, %v1075_v37 }
 0x4e2   : > { %2723 = vmatmul.mubr.msk.bf16.vlgmr.msra.gmra.mrb[12].mxu0 %vm954_vm9, %v1077_v39  ;;  %2729 = vmatmul.mubr.msk.bf16.vlgmr.msra.gmra.mrb[4].mxu1 %vm954_vm9, %v1178_v40 }
 0x4e3   : > { %2733 = vmatpush3.bf16.xpose.msra.mxu0 %v1235_v41  ;;  %2734 = vmatprep.mubr.msk.bf16.mxu0 %vm3016_vm8, %v3015_v29 }
 0x4e4   : > { %2744 = vmatprep.subr.bf16.mxu0 %v3015_v29  ;;  %2740 = vmatprep.mubr.msk.bf16.mxu1 %vm3016_vm8, %v3015_v29 }
 0x4ea   : > { %2735 = vmatmul.mubr.msk.bf16.vlgmr.msra.gmra.mrb[16].mxu0 %vm954_vm9, %v1228_v42 }
 0x4eb   : > { %2746 = vmatprep.mubr.msk.bf16.mxu0 %vm3016_vm8, %v3015_v29 }
 0x5ad   : > { %v1121_v43 = vpop.f32.mrb[0].mxu1 }
 0x5ae   : > { %1175 = vst.msk [vmem:[#allocation3] sm:$0xff] %vm954_vm9, %v1121_v43  ;;  %v2718_v44 = vpop.f32.mrb[1].mxu1 }
 0x5af   : > { %v1124_v45 = vpop.f32.mrb[2].mxu1 }
 0x5b0   : > { %v2719_v46 = vpop.f32.mrb[3].mxu1 }
 0x5b5   : > { %v1169_v47 = vpop.f32.mrb[12].mxu0  ;;  %v1221_v48 = vpop.f32.mrb[4].mxu1 }
 0x5b6   : > { %1176 = vst.msk [vmem:[#allocation3 + $0x8] sm:$0xff] %vm954_vm9, %v1169_v47  ;;  %v1277_v49 = vmul.f32 0.35355338, %v1221_v48  ;;  %v2724_v50 = vpop.f32.mrb[13].mxu0  ;;  %v2730_v51 = vpop.f32.mrb[5].mxu1 }
 0x5b7   : > { %v1172_v52 = vpop.f32.mrb[14].mxu0  ;;  %v1224_v54 = vpop.f32.mrb[6].mxu1 }
 0x5b8   : > { %v2725_v55 = vpop.f32.mrb[15].mxu0  ;;  %v2731_v57 = vpop.f32.mrb[7].mxu1  ;;  %v1279_v58 = vadd.f32 %v1277_v49, %v3280_v62 }
 0x5ba   : > { %v1281_v59 = vsel %vm954_vm9, %v1279_v58, -inf }
 0x5bb   : > { %1282 = vmax.xlane.f32.xlu0 %v1281_v59 }
 0x5bd   : > { %v1271_v60 = vpop.f32.mrb[16].mxu0 }
 0x5be   : > { %v1278_v61 = vmul.f32 0.35355338, %v1271_v60  ;;  %v2736_v63 = vpop.f32.mrb[17].mxu0 }
 0x5bf   : > { %v1274_v0 = vpop.f32.mrb[18].mxu0 }
 0x5c0   : > { %v2737_v1 = vpop.f32.mrb[19].mxu0  ;;  %v1280_v2 = vadd.f32 %v1278_v61, %v3280_v62 }
 0x5c2   : > { %v1284_v3 = vsel %vm954_vm9, %v1280_v2, -inf }
 0x5c3   : > { %1285 = vmax.xlane.f32.xlu1 %v1284_v3 }
 0x5d4   : > { %1353 = vrot.lane.b32.xlu1 %v3264_v56, %s3021_s25 }
 0x5d8   : > { %1414 = vrot.lane.b32.xlu1 %v3262_v53, %s3022_s20 }
 0x5dc   : > { %1464 = vrot.lane.b32.xlu1 %v3264_v56, %s3022_s20 }
 0x5e0   : > { %1462 = vrot.lane.b32.xlu1 %v3264_v56, %s3023_s18 }
 0x648   : > { %v1283_v4 = vpop.xlane.xlu0 %1282 }
 0x649   : > { %v1287_v5 = vsub.f32 %v1279_v58, %v1283_v4 }
 0x64b   : > { %v1289_v6 = vmul.f32 1.442695, %v1287_v5 }
 0x64d   : > { %2919 = vpow2.f32 %v1289_v6 }
 0x650   : > { %v1286_v7 = vpop.xlane.xlu1 %1285 }
 0x651   : > { %v1288_v8 = vsub.f32 %v1280_v2, %v1286_v7 }
 0x653   : > { %v1291_v9 = vmul.f32 1.442695, %v1288_v8 }
 0x654   : > { %v1354_v10 = vpop.permute.xlu1 %1353 }
 0x655   : > { %2921 = vpow2.f32 %v1291_v9  ;;  %v1359_v11 = vsel %vm1083_vm10, %v1354_v10, 0 }
 0x656   : > { %2745 = vmatpush3.bf16.msra.mxu0 %v1359_v11 }
 0x657   : > { %v2920_v12 = vpop.eup %2919  ;;  %2756 = vmatprep.subr.bf16.mxu0 %v3015_v29 }
 0x658   : > { %v1293_v13 = vsel %vm954_vm9, %v2920_v12, 0.0  ;;  %v1415_v25 = vpop.permute.xlu1 %1414 }
 0x659   : > { %1294 = vadd.xlane.f32.xlu0 %v1293_v13  ;;  %v1420_v30 = vsel %vm954_vm9, %v1415_v25, 0 }
 0x65c   : > { %v1465_v28 = vpop.permute.xlu1 %1464 }
 0x65d   : > { %v1470_v32 = vsel %vm954_vm9, %v1465_v28, 0 }
 0x65f   : > { %v2922_v16 = vpop.eup %2921 }
 0x660   : > { %v1296_v17 = vsel %vm954_vm9, %v2922_v16, 0.0  ;;  %v1463_v34 = vpop.permute.xlu1 %1462 }
 0x661   : > { %1297 = vadd.xlane.f32.xlu0 %v1296_v17 }
 0x677   : > { %1305 = vrot.lane.b32.xlu0 %v3262_v53, %s3021_s25  ;;  %s3580_s25 = scalar_lea.vmem %s3543_s7, %s3153_s19 }
 0x67b   : > { %1412 = vrot.lane.b32.xlu0 %v3262_v53, %s3023_s18  ;;  %s3584_s18 = sld [smem:[#allocation17_spill]] (!%p2626_p9) }
 0x6e6   : > { %v1295_v18 = vpop.xlane.xlu0 %1294 }
 0x6e7   : > { %2923 = vrcp.f32 %v1295_v18 }
 0x6ee   : > { %v1298_v19 = vpop.xlane.xlu0 %1297 }
 0x6ef   : > { %2925 = vrcp.f32 %v1298_v19 }
 0x6f1   : > { %v2924_v20 = vpop.eup %2923 }
 0x6f2   : > { %v1301_v21 = vmul.f32 %v2924_v20, %v2920_v12  ;;  %v1306_v22 = vpop.permute.xlu0 %1305 }
 0x6f3   : > { %v1311_v23 = vsel %vm1083_vm10, %v1306_v22, 0 }
 0x6f4   : > { %2739 = vmatpush3.bf16.msra.mxu1 %v1311_v23  ;;  %v1303_v24 = vpack.c.bf16 %v1301_v21, %v1301_v21 }
 0x6f5   : > { %2750 = vmatprep.subr.bf16.mxu1 %v3015_v29 }
 0x6f6   : > { %v1413_v33 = vpop.permute.xlu0 %1412 }
 0x6f7   : > { %2741 = vmatmul.mubr.msk.bf16.vlgmr.msra.gmra.mrb[8].mxu1 %vm954_vm9, %v1303_v24 }
 0x6f8   : > { %2752 = vmatprep.mubr.msk.bf16.mxu1 %vm3016_vm8, %v3015_v29 }
 0x6f9   : > { %v2926_v26 = vpop.eup %2925 }
 0x6fa   : > { %v1302_v27 = vmul.f32 %v2926_v26, %v2922_v16 }
 0x6fc   : > { %v1304_v31 = vpack.c.bf16 %v1302_v27, %v1302_v27 }
 0x6fd   : > { %2751 = vmatpush3.bf16.xpose.msra.mxu1 %v1420_v30 }
 0x6fe   : > { %2747 = vmatmul.mubr.msk.bf16.vlgmr.msra.gmra.mrb[20].mxu0 %vm954_vm9, %v1304_v31  ;;  %2762 = vmatprep.subr.bf16.mxu1 %v3015_v29 }
 0x6ff   : > { %2757 = vmatpush3.bf16.xpose.msra.mxu0 %v1470_v32  ;;  %2758 = vmatprep.mubr.msk.bf16.mxu0 %vm3016_vm8, %v3015_v29 }
 0x700   : > { %2768 = vmatprep.subr.bf16.mxu0 %v3015_v29 }
 0x704   : > { %2753 = vmatmul.mubr.msk.bf16.vlgmr.msra.gmra.mrb[12].mxu1 %vm954_vm9, %v1413_v33 }
 0x705   : > { %2764 = vmatprep.mubr.msk.bf16.mxu1 %vm3016_vm8, %v3015_v29 }
 0x706   : > { %2759 = vmatmul.mubr.msk.bf16.vlgmr.msra.gmra.mrb[24].mxu0 %vm954_vm9, %v1463_v34 }
 0x707   : > { %2770 = vmatprep.mubr.msk.bf16.mxu0 %vm3016_vm8, %v3015_v29 }
 0x7ca   : > { %v3348_v35 = vpop.f32.mrb[8].mxu1 }
 0x7cb   : > { %v2742_v36 = vpop.f32.mrb[9].mxu1 }
 0x7cc   : > { %v1350_v37 = vpop.f32.mrb[10].mxu1 }
 0x7cd   : > { %v2743_v38 = vpop.f32.mrb[11].mxu1 }
 0x7d1   : > { %v3350_v39 = vpop.f32.mrb[20].mxu0 }
 0x7d2   : > { %v2748_v40 = vpop.f32.mrb[21].mxu0 }
 0x7d3   : > { %v1398_v41 = vpop.f32.mrb[22].mxu0 }
 0x7d4   : > { %v2749_v42 = vpop.f32.mrb[23].mxu0 }
 0x7d7   : > { %v1456_v43 = vpop.f32.mrb[12].mxu1 }
 0x7d8   : > { %v1512_v44 = vmul.f32 0.35355338, %v1456_v43  ;;  %v2754_v45 = vpop.f32.mrb[13].mxu1 }
 0x7d9   : > { %v1459_v46 = vpop.f32.mrb[14].mxu1  ;;  %v1506_v47 = vpop.f32.mrb[24].mxu0 }
 0x7da   : > { %v1513_v48 = vmul.f32 0.35355338, %v1506_v47  ;;  %v2755_v49 = vpop.f32.mrb[15].mxu1  ;;  %v2760_v50 = vpop.f32.mrb[25].mxu0  ;;  %v1514_v51 = vadd.f32 %v1512_v44, %v3280_v62 }
 0x7db   : > { %v1509_v52 = vpop.f32.mrb[26].mxu0 }
 0x7dc   : > { %v2761_v54 = vpop.f32.mrb[27].mxu0  ;;  %v1516_v55 = vsel %vm954_vm9, %v1514_v51, -inf  ;;  %v1515_v57 = vadd.f32 %v1513_v48, %v3280_v62 }
 0x7dd   : > { %1517 = vmax.xlane.f32.xlu0 %v1516_v55 }
 0x7de   : > { %v1519_v58 = vsel %vm954_vm9, %v1515_v57, -inf }
 0x7df   : > { %1520 = vmax.xlane.f32.xlu1 %v1519_v58 }
 0x7f0   : > { %1588 = vrot.lane.b32.xlu1 %v3264_v56, %s3024_s17 }
 0x7f4   : > { %1649 = vrot.lane.b32.xlu1 %v3262_v53, %s3025_s29 }
 0x7f8   : > { %1699 = vrot.lane.b32.xlu1 %v3264_v56, %s3025_s29 }
 0x7fc   : > { %1697 = vrot.lane.b32.xlu1 %v3264_v56, %s3026_s22 }
 0x86a   : > { %v1518_v59 = vpop.xlane.xlu0 %1517 }
 0x86b   : > { %v1522_v60 = vsub.f32 %v1514_v51, %v1518_v59 }
 0x86c   : > { %v1521_v61 = vpop.xlane.xlu1 %1520 }
 0x86d   : > { %v1524_v63 = vmul.f32 1.442695, %v1522_v60  ;;  %v1523_v0 = vsub.f32 %v1515_v57, %v1521_v61 }
 0x86f   : > { %2927 = vpow2.f32 %v1524_v63  ;;  %v1526_v1 = vmul.f32 1.442695, %v1523_v0 }
 0x870   : > { %v1589_v2 = vpop.permute.xlu1 %1588 }
 0x871   : > { %2929 = vpow2.f32 %v1526_v1  ;;  %v1594_v3 = vsel %vm1083_vm10, %v1589_v2, 0 }
 0x872   : > { %2769 = vmatpush3.bf16.msra.mxu0 %v1594_v3 }
 0x873   : > { %2780 = vmatprep.subr.bf16.mxu0 %v3015_v29 }
 0x874   : > { %v1650_v13 = vpop.permute.xlu1 %1649 }
 0x875   : > { %v1655_v21 = vsel %vm954_vm9, %v1650_v13, 0 }
 0x878   : > { %v1700_v20 = vpop.permute.xlu1 %1699 }
 0x879   : > { %v2928_v4 = vpop.eup %2927  ;;  %v1705_v23 = vsel %vm954_vm9, %v1700_v20, 0 }
 0x87a   : > { %v1528_v5 = vsel %vm954_vm9, %v2928_v4, 0.0 }
 0x87b   : > { %v2930_v6 = vpop.eup %2929  ;;  %1529 = vadd.xlane.f32.xlu0 %v1528_v5 }
 0x87c   : > { %v1531_v7 = vsel %vm954_vm9, %v2930_v6, 0.0  ;;  %v1698_v25 = vpop.permute.xlu1 %1697 }
 0x87f   : > { %1532 = vadd.xlane.f32.xlu0 %v1531_v7 }
 0x895   : > { %1540 = vrot.lane.b32.xlu0 %v3262_v53, %s3024_s17 }
 0x899   : > { %1647 = vrot.lane.b32.xlu0 %v3262_v53, %s3026_s22 }
 0x908   : > { %v1530_v8 = vpop.xlane.xlu0 %1529 }
 0x909   : > { %2931 = vrcp.f32 %v1530_v8 }
 0x90c   : > { %v1533_v9 = vpop.xlane.xlu0 %1532 }
 0x90d   : > { %2933 = vrcp.f32 %v1533_v9 }
 0x910   : > { %v1541_v10 = vpop.permute.xlu0 %1540 }
 0x911   : > { %v1546_v11 = vsel %vm1083_vm10, %v1541_v10, 0 }
 0x912   : > { %2763 = vmatpush3.bf16.msra.mxu1 %v1546_v11  ;;  %v2895_v11 = vld [vmem:[%s3176_s16] sm:$0xff]  }
 0x913   : > { %v2932_v12 = vpop.eup %2931  ;;  %2774 = vmatprep.subr.bf16.mxu1 %v3015_v29 }
 0x914   : > { %v1536_v16 = vmul.f32 %v2932_v12, %v2928_v4  ;;  %v1648_v24 = vpop.permute.xlu0 %1647  ;;  %v2896_v12 = vld [vmem:[%s3176_s16 + $0x8] sm:$0xff]  }
 0x916   : > { %v1538_v17 = vpack.c.bf16 %v1536_v16, %v1536_v16 }
 0x917   : > { %v2934_v18 = vpop.eup %2933 }
 0x918   : > { %v1537_v19 = vmul.f32 %v2934_v18, %v2930_v6  ;;  %2765 = vmatmul.mubr.msk.bf16.vlgmr.msra.gmra.mrb[16].mxu1 %vm954_vm9, %v1538_v17 }
 0x919   : > { %2776 = vmatprep.mubr.msk.bf16.mxu1 %vm3016_vm8, %v3015_v29 }
 0x91a   : > { %v1539_v22 = vpack.c.bf16 %v1537_v19, %v1537_v19 }
 0x91b   : > { %2775 = vmatpush3.bf16.xpose.msra.mxu1 %v1655_v21 }
 0x91c   : > { %2771 = vmatmul.mubr.msk.bf16.vlgmr.msra.gmra.mrb[28].mxu0 %vm954_vm9, %v1539_v22  ;;  %2786 = vmatprep.subr.bf16.mxu1 %v3015_v29 }
 0x91d   : > { %2781 = vmatpush3.bf16.xpose.msra.mxu0 %v1705_v23  ;;  %2782 = vmatprep.mubr.msk.bf16.mxu0 %vm3016_vm8, %v3015_v29 }
 0x91e   : > { %2792 = vmatprep.subr.bf16.mxu0 %v3015_v29 }
 0x922   : > { %2777 = vmatmul.mubr.msk.bf16.vlgmr.msra.gmra.mrb[20].mxu1 %vm954_vm9, %v1648_v24 }
 0x923   : > { %2788 = vmatprep.mubr.msk.bf16.mxu1 %vm3016_vm8, %v3015_v29 }
 0x924   : > { %2783 = vmatmul.mubr.msk.bf16.vlgmr.msra.gmra.mrb[32].mxu0 %vm954_vm9, %v1698_v25 }
 0x925   : > { %2794 = vmatprep.mubr.msk.bf16.mxu0 %vm3016_vm8, %v3015_v29 }
 0x9eb   : > { %v1582_v26 = vpop.f32.mrb[16].mxu1 }
 0x9ec   : > { %v2766_v27 = vpop.f32.mrb[17].mxu1 }
 0x9ed   : > { %v1585_v28 = vpop.f32.mrb[18].mxu1 }
 0x9ee   : > { %v2767_v30 = vpop.f32.mrb[19].mxu1 }
 0x9ef   : > { %v1630_v31 = vpop.f32.mrb[28].mxu0  ;;  %v2608_v30 = vld [vmem:[%s3580_s25] ss:$0 sm:$0xff] }
 0x9f0   : > { %v2772_v32 = vpop.f32.mrb[29].mxu0 }
 0x9f1   : > { %v1633_v33 = vpop.f32.mrb[30].mxu0 }
 0x9f2   : > { %v2773_v34 = vpop.f32.mrb[31].mxu0 }
 0x9f5   : > { %v1691_v36 = vpop.f32.mrb[20].mxu1 }
 0x9f6   : > { %v1747_v37 = vmul.f32 0.35355338, %v1691_v36  ;;  %v2778_v38 = vpop.f32.mrb[21].mxu1 }
 0x9f7   : > { %v1694_v40 = vpop.f32.mrb[22].mxu1  ;;  %v1741_v41 = vpop.f32.mrb[32].mxu0 }
 0x9f8   : > { %v1748_v42 = vmul.f32 0.35355338, %v1741_v41  ;;  %v2779_v43 = vpop.f32.mrb[23].mxu1  ;;  %v2784_v44 = vpop.f32.mrb[33].mxu0  ;;  %v1749_v45 = vadd.f32 %v1747_v37, %v3280_v62 }
 0x9f9   : > { %v1744_v46 = vpop.f32.mrb[34].mxu0 }
 0x9fa   : > { %v2785_v47 = vpop.f32.mrb[35].mxu0  ;;  %v1751_v48 = vsel %vm954_vm9, %v1749_v45, -inf  ;;  %v1750_v49 = vadd.f32 %v1748_v42, %v3280_v62 }
 0x9fb   : > { %1752 = vmax.xlane.f32.xlu0 %v1751_v48 }
 0x9fc   : > { %v1754_v50 = vsel %vm954_vm9, %v1750_v49, -inf }
 0x9fd   : > { %1755 = vmax.xlane.f32.xlu1 %v1754_v50  ;;  %v2897_v50 = vld [vmem:[%s3193_s4] sm:$0xff]  }
 0xa0e   : > { %1823 = vrot.lane.b32.xlu1 %v3264_v56, %s3027_s21 }
 0xa12   : > { %1403 = vrot.lane.b32.xlu1 %v3348_v35, %s3028_s24 }
 0xa16   : > { %1405 = vrot.lane.b32.xlu1 %v3350_v39, %s3028_s24 }
 0xa1a   : > { %1640 = vrot.lane.b32.xlu1 %v1630_v31, %s3029_s28 }
 0xa88   : > { %v1753_v51 = vpop.xlane.xlu0 %1752 }
 0xa89   : > { %v1757_v52 = vsub.f32 %v1749_v45, %v1753_v51  ;;  %v2898_v51 = vld [vmem:[%s3193_s4 + $0x8] sm:$0xff]  }
 0xa8a   : > { %v1756_v54 = vpop.xlane.xlu1 %1755 }
 0xa8b   : > { %v1759_v55 = vmul.f32 1.442695, %v1757_v52  ;;  %v1758_v62 = vsub.f32 %v1750_v49, %v1756_v54 }
 0xa8d   : > { %2935 = vpow2.f32 %v1759_v55  ;;  %v1761_v57 = vmul.f32 1.442695, %v1758_v62 }
 0xa8e   : > { %v1824_v58 = vpop.permute.xlu1 %1823 }
 0xa8f   : > { %2937 = vpow2.f32 %v1761_v57  ;;  %v1829_v59 = vsel %vm1083_vm10, %v1824_v58, 0 }
 0xa90   : > { %2793 = vmatpush3.bf16.msra.mxu0 %v1829_v59 }
 0xa91   : > { %2806 = vmatprep.subr.bf16.mxu0 %v3015_v29 }
 0xa92   : > { %v1404_v56 = vpop.permute.xlu1 %1403 }
 0xa93   : > { %1410 = vst.msk [vmem:[#allocation3] sm:$0xff] %vm1409_vm11, %v1404_v56 }
 0xa96   : > { %v1406_v35 = vpop.permute.xlu1 %1405 }
 0xa97   : > { %v2936_v39 = vpop.eup %2935  ;;  %1411 = vst.msk [vmem:[#allocation3 + $0x8] sm:$0xff] %vm1409_vm11, %v1406_v35  ;;  %v2609_v35 = vld [vmem:[%s770_s15] ss:$0 sm:$0xff] }
 0xa98   : > { %v1763_v60 = vsel %vm954_vm9, %v2936_v39, 0.0 }
 0xa99   : > { %v2938_v61 = vpop.eup %2937  ;;  %1764 = vadd.xlane.f32.xlu0 %v1763_v60 }
 0xa9a   : > { %v1641_v63 = vpop.permute.xlu1 %1640  ;;  %v1766_v0 = vsel %vm954_vm9, %v2938_v61, 0.0 }
 0xa9b   : > { %1646 = vst.msk [vmem:[#allocation3 + $0x8] sm:$0xff] %vm1644_vm12, %v1641_v63  ;;  %v2610_v63 = vld [vmem:[%s773_s0] ss:$0 sm:$0xff] }
 0xa9d   : > { %1767 = vadd.xlane.f32.xlu0 %v1766_v0 }
 0xab3   : > { %1775 = vrot.lane.b32.xlu0 %v3262_v53, %s3027_s21  ;;  %s3582_s21 = sld [smem:[#allocation18_spill]] (!%p2626_p9) }
 0xab7   : > { %1638 = vrot.lane.b32.xlu0 %v1582_v26, %s3029_s28 }
 0xb26   : > { %v1765_v1 = vpop.xlane.xlu0 %1764 }
 0xb27   : > { %2939 = vrcp.f32 %v1765_v1 }
 0xb2a   : > { %v1768_v2 = vpop.xlane.xlu0 %1767 }
 0xb2b   : > { %2941 = vrcp.f32 %v1768_v2 }
 0xb2e   : > { %v1776_v3 = vpop.permute.xlu0 %1775 }
 0xb2f   : > { %v1781_v4 = vsel %vm1083_vm10, %v1776_v3, 0 }
 0xb30   : > { %2787 = vmatpush3.bf16.msra.mxu1 %v1781_v4  ;;  %v2899_v4 = vld [vmem:[%s3203_s2] sm:$0xff]  }
 0xb31   : > { %v2940_v5 = vpop.eup %2939  ;;  %2798 = vmatprep.subr.bf16.mxu1 %v3015_v29 }
 0xb32   : > { %v1771_v6 = vmul.f32 %v2940_v5, %v2936_v39  ;;  %v1639_v7 = vpop.permute.xlu0 %1638  ;;  %v2900_v5 = vld [vmem:[%s3203_s2 + $0x8] sm:$0xff]  }
 0xb33   : > { %1645 = vst.msk [vmem:[#allocation3] sm:$0xff] %vm1644_vm12, %v1639_v7  ;;  %v2902_v7 = vld [vmem:[%s3203_s2 + $0x18] sm:$0xff]  }
 0xb34   : > { %v1773_v8 = vpack.c.bf16 %v1771_v6, %v1771_v6  ;;  %v2901_v6 = vld [vmem:[%s3203_s2 + $0x10] sm:$0xff]  }
 0xb35   : > { %v2942_v53 = vpop.eup %2941 }
 0xb36   : > { %v1772_v9 = vmul.f32 %v2942_v53, %v2938_v61  ;;  %2789 = vmatmul.mubr.msk.bf16.vlgmr.msra.gmra.mrb[24].mxu1 %vm954_vm9, %v1773_v8  ;;  %v2903_v8 = vld [vmem:[%s3203_s2 + $0x20] sm:$0xff]   ;;  %v2904_v53 = vld [vmem:[%s3203_s2 + $0x28] sm:$0xff]  }
 0xb37   : > { %2802 = vmatprep.mubr.msk.bf16.mxu1 %vm3016_vm8, %v3015_v29  ;;  %2799 = vmatpush3.bf16.msra.mxu1 %v2895_v11  ;;  %v2611_v11 = vld [vmem:[%s781_s6] ss:$0 sm:$0xff] }
 0xb38   : > { %v1774_v10 = vpack.c.bf16 %v1772_v9, %v1772_v9  ;;  %2800 = vmatprep.subr.bf16.mxu1 %v3015_v29  ;;  %v2905_v9 = vld [vmem:[%s3203_s2 + $0x30] sm:$0xff]  }
 0xb3a   : > { %2795 = vmatmul.mubr.msk.bf16.vlgmr.msra.gmra.mrb[36].mxu0 %vm954_vm9, %v1774_v10  ;;  %v2906_v10 = vld [vmem:[%s3203_s2 + $0x38] sm:$0xff]  }
 0xb3b   : > { %2810 = vmatprep.mubr.msk.bf16.mxu0 %vm3016_vm8, %v3015_v29  ;;  %2801 = vmatpush3.bf16.msra.mxu1 %v2896_v12 }
 0xb3c   : > { %2814 = vmatprep.subr.bf16.mxu1 %v3015_v29  ;;  %2807 = vmatpush3.bf16.msra.mxu0 %v2897_v50 }
 0xb3d   : > { %2808 = vmatprep.subr.bf16.mxu0 %v3015_v29 }
 0xb40   : > { %2809 = vmatpush3.bf16.msra.mxu0 %v2898_v51 }
 0xc09   : > { %v1817_v13 = vpop.f32.mrb[24].mxu1 }
 0xc0a   : > { %1873 = vrot.lane.b32.xlu0 %v1817_v13, %s3030_s23  ;;  %v2790_v16 = vpop.f32.mrb[25].mxu1 }
 0xc0b   : > { %v1820_v17 = vpop.f32.mrb[26].mxu1 }
 0xc0c   : > { %v2791_v18 = vpop.f32.mrb[27].mxu1 }
 0xc0d   : > { %v1865_v19 = vpop.f32.mrb[36].mxu0 }
 0xc0e   : > { %1875 = vrot.lane.b32.xlu1 %v1865_v19, %s3030_s23  ;;  %v2796_v20 = vpop.f32.mrb[37].mxu0 }
 0xc0f   : > { %v1868_v21 = vpop.f32.mrb[38].mxu0 }
 0xc10   : > { %v2797_v22 = vpop.f32.mrb[39].mxu0 }
 0xc7c   : > { %v1874_v23 = vpop.permute.xlu0 %1873 }
 0xc7d   : > { %1880 = vst.msk [vmem:[#allocation3] sm:$0xff] %vm1879_vm13, %v1874_v23 }
 0xc80   : > { %v1876_v24 = vpop.permute.xlu1 %1875 }
 0xc81   : > { %1881 = vst.msk [vmem:[#allocation3 + $0x8] sm:$0xff] %vm1879_vm13, %v1876_v24 }
 0xc84   : > { %v1882_v25 = vld [vmem:[#allocation3] sm:$0xff] }
 0xc88   : > { %v1883_v26 = vld [vmem:[#allocation3 + $0x8] sm:$0xff] }
 0xc89   : > { %v1884_v27 = vpack.c.bf16 %v1883_v26, %v1882_v25 }
 0xc8b   : > { %2803 = vmatmul.mubr.msk.bf16.vlgmr.msra.gmra.mrb[28].mxu1 %vm836_vm7, %v1884_v27 }
 0xc8c   : > { %2830 = vmatprep.mubr.msk.bf16.mxu1 %vm3016_vm8, %v3015_v29  ;;  %2815 = vmatpush3.bf16.msra.mxu1 %v2899_v4 }
 0xc8d   : > { %2816 = vmatprep.subr.bf16.mxu1 %v3015_v29 }
 0xc90   : > { %2817 = vmatpush3.bf16.msra.mxu1 %v2900_v5 }
 0xc91   : > { %2818 = vmatprep.subr.bf16.mxu1 %v3015_v29 }
 0xc94   : > { %2819 = vmatpush3.bf16.msra.mxu1 %v2901_v6 }
 0xc95   : > { %2820 = vmatprep.subr.bf16.mxu1 %v3015_v29 }
 0xc98   : > { %2821 = vmatpush3.bf16.msra.mxu1 %v2902_v7 }
 0xc99   : > { %2822 = vmatprep.subr.bf16.mxu1 %v3015_v29 }
 0xc9c   : > { %2823 = vmatpush3.bf16.msra.mxu1 %v2903_v8 }
 0xc9d   : > { %2824 = vmatprep.subr.bf16.mxu1 %v3015_v29 }
 0xca0   : > { %2825 = vmatpush3.bf16.msra.mxu1 %v2904_v53 }
 0xca1   : > { %2826 = vmatprep.subr.bf16.mxu1 %v3015_v29 }
 0xca4   : > { %2827 = vmatpush3.bf16.msra.mxu1 %v2905_v9 }
 0xca5   : > { %2828 = vmatprep.subr.bf16.mxu1 %v3015_v29 }
 0xca8   : > { %2829 = vmatpush3.bf16.msra.mxu1 %v2906_v10 }
 0xd5e   : > { %v1938_v28 = vpop.f32.mrb[28].mxu1 }
 0xd5f   : > { %v1945_v31 = vadd.f32 %v1938_v28, %v3222_v14  ;;  %v2804_v32 = vpop.f32.mrb[29].mxu1 }
 0xd60   : > { %v1941_v33 = vpop.f32.mrb[30].mxu1 }
 0xd61   : > { %v3421_v34 = vadd.f32 %v2608_v30, %v1945_v31  ;;  %v1946_v36 = vadd.f32 %v1941_v33, %v3224_v15  ;;  %v2805_v37 = vpop.f32.mrb[31].mxu1  ;;  %v2617_v33 = vld [vmem:[%s789_s30] ss:$0 sm:$0xff]  ;;  %s3581_s30 = sld [smem:[#allocation12_spill]] (!%p2626_p9) }
 0xd63   : > { %v3424_v38 = vadd.f32 %v2608_v30, %v1946_v36  ;;  %v1958_v40 = vsel %vm836_vm7, %v3421_v34, 0.0 }
 0xd64   : > { %1959 = vadd.xlane.f32.xlu0 %v1958_v40 }
 0xd65   : > { %v1961_v41 = vsel %vm836_vm7, %v3424_v38, 0.0 }
 0xd66   : > { %1962 = vadd.xlane.f32.xlu1 %v1961_v41 }
 0xdf1   : > { %v1960_v14 = vpop.xlane.xlu0 %1959 }
 0xdf2   : > { %v1964_v42 = vmul.f32 0.03125, %v1960_v14 }
 0xdf3   : > { %v1963_v43 = vpop.xlane.xlu1 %1962 }
 0xdf4   : > { %v1966_v44 = vsub.f32 %v3421_v34, %v1964_v42  ;;  %v1965_v45 = vmul.f32 0.03125, %v1963_v43 }
 0xdf6   : > { %v1967_v15 = vsub.f32 %v3424_v38, %v1965_v45  ;;  %v1968_v46 = vmul.f32 %v1966_v44, %v1966_v44  ;;  %v2207_v45 = vld [vmem:[%s3581_s30] sm:$0x3] (!%p2626_p9) }
 0xdf8   : > { %v1970_v47 = vsel %vm836_vm7, %v1968_v46, 0.0  ;;  %v1969_v48 = vmul.f32 %v1967_v15, %v1967_v15  ;;  %v3032_v46 = vmov (!%p2626_p9), 0.0  }
 0xdf9   : > { %1971 = vadd.xlane.f32.xlu0 %v1970_v47  ;;  %2834 = vmatprep.subr.bf16.mxu0 (!%p2626_p9), %v3032_v46 }
 0xdfa   : > { %v1973_v49 = vsel %vm836_vm7, %v1969_v48, 0.0 }
 0xdfd   : > { %1974 = vadd.xlane.f32.xlu0 %v1973_v49 }
 0xe86   : > { %v1972_v52 = vpop.xlane.xlu0 %1971 }
 0xe87   : > { %v1976_v54 = vmul.f32 0.03125, %v1972_v52 }
 0xe89   : > { %v1978_v55 = vadd.f32 1e-05, %v1976_v54 }
 0xe8a   : > { %v1975_v62 = vpop.xlane.xlu0 %1974 }
 0xe8b   : > { %2943 = vrsqrt.f32 %v1978_v55  ;;  %v1977_v57 = vmul.f32 0.03125, %v1975_v62 }
 0xe8d   : > { %v1979_v58 = vadd.f32 1e-05, %v1977_v57 }
 0xe8f   : > { %2945 = vrsqrt.f32 %v1979_v58 }
 0xe95   : > { %v2944_v59 = vpop.eup %2943 }
 0xe96   : > { %v1982_v56 = vmul.f32 %v2944_v59, %v1966_v44 }
 0xe98   : > { %v1990_v60 = vmul.f32 %v2609_v35, %v1982_v56 }
 0xe99   : > { %v2946_v39 = vpop.eup %2945 }
 0xe9a   : > { %v1983_v61 = vmul.f32 %v2946_v39, %v1967_v15  ;;  %v1998_v1 = vadd.f32 %v2610_v63, %v1990_v60  ;;  %v3031_v15 = vmov (!%p2626_p9), 0  }
 0xe9b   : > { %2955 = vset.pattern.permute.xlu0 (!%p2626_p9), %v3031_v15 }
 0xe9c   : > { %v1991_v0 = vmul.f32 %v2609_v35, %v1983_v61  ;;  %2209 = vperm.xlu0 (!%p2626_p9), %2955, %v2207_v45  }
 0xe9e   : > { %v1999_v2 = vadd.f32 %v2610_v63, %v1991_v0 }
 0xea0   : > { %v2000_v3 = vpack.c.bf16 %v1999_v2, %v1998_v1 }
 0xea2   : > { %2811 = vmatmul.mubr.msk.bf16.vlgmr.msra.gmra.mrb[40].mxu0 %vm836_vm7, %v2000_v3 }
 0xea3   : > { %2838 = vmatprep.mubr.msk.bf16.mxu0 (!%p2626_p9), %vm3033_vm1, %v3032_v46 }
 0xf75   : > { %v2061_v12 = vpop.f32.mrb[40].mxu0 }
 0xf76   : > { %v2062_v13 = vadd.f32 %v2611_v11, %v2061_v12  ;;  %v2812_v16 = vpop.f32.mrb[41].mxu0 }
 0xf77   : > { %v2064_v17 = vpop.f32.mrb[42].mxu0 }
 0xf78   : > { %v2615_v18 = vmul.f32 -1.702, %v2062_v13  ;;  %v2065_v19 = vadd.f32 %v2611_v11, %v2064_v17  ;;  %v2813_v20 = vpop.f32.mrb[43].mxu0 }
 0xf79   : > { %v2956_v20 = vld [vmem:[%s3582_s21] sm:$0xff] (!%p2626_p9)  }
 0xf7a   : > { %v2072_v21 = vmul.f32 1.442695, %v2615_v18  ;;  %v2616_v22 = vmul.f32 -1.702, %v2065_v19  ;;  %2835 = vmatpush3.bf16.msra.mxu0 (!%p2626_p9), %v2956_v20 }
 0xf7b   : > { %2836 = vmatprep.subr.bf16.mxu0 (!%p2626_p9), %v3032_v46 }
 0xf7c   : > { %2947 = vpow2.f32 %v2072_v21  ;;  %v2074_v23 = vmul.f32 1.442695, %v2616_v22  ;;  %v2957_v21 = vld [vmem:[%s3582_s21 + $0x8] sm:$0xff] (!%p2626_p9)  }
 0xf7e   : > { %2949 = vpow2.f32 %v2074_v23  ;;  %2837 = vmatpush3.bf16.msra.mxu0 (!%p2626_p9), %v2957_v21 }
 0xf86   : > { %v2948_v29 = vpop.eup %2947 }
 0xf87   : > { %v2076_v24 = vadd.f32 1.0, %v2948_v29 }
 0xf88   : > { %v2950_v25 = vpop.eup %2949 }
 0xf89   : > { %2951 = vrcp.f32 %v2076_v24  ;;  %v2077_v26 = vadd.f32 1.0, %v2950_v25  ;;  %v2628_v25 = vld [vmem:[%s3583_s26] ss:$0 sm:$0xff] (!%p2626_p9) }
 0xf8b   : > { %2953 = vrcp.f32 %v2077_v26 }
 0xf93   : > { %v2952_v27 = vpop.eup %2951 }
 0xf94   : > { %v2082_v30 = vmul.f32 %v2952_v27, %v2062_v13 }
 0xf95   : > { %v2954_v28 = vpop.eup %2953 }
 0xf96   : > { %v2083_v31 = vmul.f32 %v2954_v28, %v2065_v19  ;;  %v2629_v28 = vld [vmem:[%s3584_s18] ss:$0 sm:$0xff] (!%p2626_p9) }
 0xf98   : > { %v2084_v32 = vpack.c.bf16 %v2083_v31, %v2082_v30 }
 0xf9a   : > { %2831 = vmatmul.mubr.bf16.vlgmr.msra.gmra.mrb[32].mxu1 %v2084_v32 }
0x106d   : > { %v2190_v36 = vpop.f32.mrb[32].mxu1 }
0x106e   : > { %v2191_v37 = vadd.f32 %v2617_v33, %v2190_v36  ;;  %v2832_v40 = vpop.f32.mrb[33].mxu1  ;;  %2204 = sbr.rel (%p2626_p9) target bundleno = 4891 (0x131b), region = 104 }
0x106f   : > { %v2193_v41 = vpop.f32.mrb[34].mxu1 }
0x1070   : > { %v2197_v14 = vadd.f32 %v2191_v37, %v3421_v34  ;;  %v2194_v42 = vadd.f32 %v2617_v33, %v2193_v41  ;;  %v2833_v43 = vpop.f32.mrb[35].mxu1  ;;  %v2205_v34 = vlaneseq (!%p2626_p9) }
0x1072   : > { %2199 = vst.msk [vmem:[#allocation2] sm:$0xff] %vm836_vm7, %v2197_v14  ;;  %v2198_v44 = vadd.f32 %v2194_v42, %v3424_v38  ;;  %v2215_v47 = vshrl.u32 (!%p2626_p9), %v2205_v34, 7  ;;  %v2206_v48 = vand.u32 (!%p2626_p9), 127, %v2205_v34  ;;  %v2210_v38 = vpop.permute.xlu0 (!%p2626_p9), %2209 }
0x1074   : > { %2200 = vst.msk [vmem:[#allocation2 + $0x8] sm:$0xff] %vm836_vm7, %v2198_v44  ;;  %v2223_v49 = vsub.s32 (!%p2626_p9), 1, %v2215_v47  ;;  %v2216_v50 = vsub.s32 (!%p2626_p9), 0, %v2215_v47  ;;  %vm2211_vm14 = vcmp.eq.s32.totalorder (!%p2626_p9), %v2206_v48, %v2210_v38 }
0x1075   : > { %v2627_v51 = vsel %vm2211_vm14, 1.0, %v3032_v46 }
0x1076   : > { %v2224_v52 = vrot.slane %v2627_v51, %v2223_v49  ;;  %v2217_v54 = vrot.slane %v2627_v51, %v2216_v50 }
0x1078   : > { %2226 = vbcast.lane.b32.xlu1 %v2224_v52, 256  ;;  %2219 = vbcast.lane.b32.xlu0 %v2217_v54, 256 }
0x10ea   : > { %v2227_v55 = vpop.permute.xlu1 %2226  ;;  %v2220_v62 = vpop.permute.xlu0 %2219 }
0x10eb   : > { %v2229_v57 = vmul.f32 %v2227_v55, %v2198_v44  ;;  %v2228_v58 = vmul.f32 %v2220_v62, %v2197_v14 }
0x10ed   : > { %v2237_v59 = vsel %vm836_vm7, %v2229_v57, 0.0  ;;  %v2230_v56 = vsel %vm836_vm7, %v2228_v58, 0.0 }
0x10ee   : > { %v2238_v35 = vrot.slane %v2237_v59, 4  ;;  %v2231_v39 = vrot.slane %v2230_v56, 4 }
0x10f0   : > { %v2239_v60 = vadd.f32 %v2238_v35, %v2237_v59  ;;  %v2232_v61 = vadd.f32 %v2231_v39, %v2230_v56 }
0x10f2   : > { %v2240_v63 = vrot.slane %v2239_v60, 2  ;;  %v2233_v0 = vrot.slane %v2232_v61, 2 }
0x10f4   : > { %v2241_v1 = vadd.f32 %v2240_v63, %v2239_v60  ;;  %v2234_v2 = vadd.f32 %v2233_v0, %v2232_v61 }
0x10f6   : > { %v2242_v3 = vrot.slane %v2241_v1, 1  ;;  %v2235_v4 = vrot.slane %v2234_v2, 1 }
0x10f8   : > { %v2236_v5 = vadd.f32 %v2235_v4, %v2234_v2  ;;  %v2243_v6 = vadd.f32 %v2242_v3, %v2241_v1 }
0x10fa   : > { %v2249_v7 = vsel %vm2248_vm15, %v2243_v6, %v2236_v5 }
0x10fb   : > { %v2252_v8 = vsel %vm2251_vm0, %v2249_v7, 0.0 }
0x10fc   : > { %2253 = vadd.xlane.f32.xlu1 %v2252_v8 }
0x1189   : > { %v2254_v53 = vpop.xlane.xlu1 %2253 }
0x118a   : > { %v2255_v9 = vmul.f32 0.03125, %v2254_v53 }
0x118c   : > { %v2257_v10 = vrot.slane %v2255_v9, 1  ;;  %v2260_v11 = vsub.f32 %v2236_v5, %v2255_v9 }
0x118e   : > { %v2261_v12 = vsub.f32 %v2243_v6, %v2257_v10  ;;  %v2262_v16 = vmul.f32 %v2260_v11, %v2260_v11 }
0x1190   : > { %v2263_v13 = vmul.f32 %v2261_v12, %v2261_v12 }
0x1192   : > { %v2266_v17 = vrot.slane %v2263_v13, 7 }
0x1194   : > { %v2267_v18 = vsel %vm2248_vm15, %v2266_v17, %v2262_v16 }
0x1195   : > { %v2269_v19 = vsel %vm2251_vm0, %v2267_v18, 0.0 }
0x1196   : > { %2270 = vadd.xlane.f32.xlu0 %v2269_v19 }
0x1223   : > { %v2271_v22 = vpop.xlane.xlu0 %2270 }
0x1224   : > { %v2272_v23 = vmul.f32 0.03125, %v2271_v22 }
0x1226   : > { %v2273_v29 = vadd.f32 1e-05, %v2272_v23 }
0x1228   : > { %2958 = vrsqrt.f32 %v2273_v29 }
0x1232   : > { %v2959_v24 = vpop.eup %2958 }
0x1233   : > { %v2276_v26 = vrot.slane %v2959_v24, 1  ;;  %v2279_v27 = vmul.f32 %v2959_v24, %v2260_v11 }
0x1235   : > { %v2280_v30 = vmul.f32 %v2276_v26, %v2261_v12  ;;  %v2287_v31 = vmul.f32 %v2628_v25, %v2279_v27 }
0x1237   : > { %v2288_v32 = vmul.f32 %v2628_v25, %v2280_v30  ;;  %v2295_v33 = vadd.f32 %v2629_v28, %v2287_v31 }
0x1239   : > { %v2296_v36 = vadd.f32 %v2629_v28, %v2288_v32  ;;  %v2297_v37 = vpack.c.bf16 %v2295_v33, %v2295_v33 }
0x123b   : > { %v2298_v40 = vpack.c.bf16 %v2296_v36, %v2296_v36  ;;  %v2305_v14 = vunpack.c.l.b16 %v2297_v37 }
0x123d   : > { %v2306_v41 = vunpack.c.l.b16 %v2298_v40 }
0x123f   : > { %v2307_v42 = vrot.slane %v2306_v41, 7 }
0x1241   : > { %v2308_v43 = vsel %vm2248_vm15, %v2307_v42, %v2305_v14 }
0x1242   : > { %v2309_v44 = vpack.c.b16 %v2308_v43, %v2308_v43 }
0x1244   : > { %2839 = vmatmul.mubr.msk.bf16.vlgmr.msra.gmra.mrb[0].mxu0 %vm836_vm7, %v2309_v44 }
0x1317   : > { %v2359_v45 = vpop.f32.mrb[0].mxu0 }
0x1318   : > { %2366 = vst.msk [vmem:[#allocation5] sm:$0x3] %vm2365_vm2, %v2359_v45  ;;  %v2840_v15 = vpop.f32.mrb[1].mxu0 }
0x1319   : > { %v2362_v46 = vpop.f32.mrb[2].mxu0 }
0x131a   : > { %v2841_v34 = vpop.f32.mrb[3].mxu0 }
0x131b PF: > { %s3585_s4 = sld [smem:[#allocation9_spill]]  ;;  %s3034_s0 = smov [#allocation5]  }
0x131c   : > { %s2376_s6 = sshll.u32 %s3034_s0, 4  ;;  %s2377_s6 = int_to_ptr.vmem [resolvable:$true] %s2376_s6 }
0x131d   : > { %s2960_s2 = scalar_lea.vmem %s2377_s6, 32  ;;  %p2967_p0 = scmp.lt.s32.totalorder %s2377_s6, %s2377_s6 }
0x131e   : > { %p2961_p11 = scmp.ne.s32.totalorder %s2377_s6, %s2960_s2  ;;  %p2968_p1 = scmp.lt.s32.totalorder %s2960_s2, %s2960_s2 }
0x1320   : > { %p2969_p2 = por %p2968_p1, %p2967_p0 }
0x1321   : > { %s3586_s17 = sadd.s32 4294967295, %s3585_s4  }
0x1322   : > { %p3501_p10 = scmp.eq.s32.totalorder %s3586_s17, 1 }
0x1324   : > { %p2962_p12 = pnand %p2961_p11, %p3501_p10 }
0x1326   : > { %p2963_p13 = pneg %p2962_p12 }
0x1328   : > { %p2970_p3 = pnand %p2969_p2, %p2963_p13 }
0x132a   : > { %2973 = shalt.err (!%p2970_p3)
}
0x132b   : > { %s3588_s30 = sld [smem:[#allocation19_spill]] }
0x1331   : > { %s2974_s27 = scalar_lea.hbm %s3588_s30, 32 }
0x1332   : > { %p2975_p4 = scmp.ne.s32.totalorder %s3588_s30, %s2974_s27  ;;  %p2980_p7 = scmp.lt.u32.totalorder %s2974_s27, %s3588_s30 }
0x1334   : > { %p2976_p5 = pnand %p2975_p4, %p3501_p10 }
0x1336   : > { %p2977_p6 = pneg %p2976_p5 }
0x1338   : > { %p2982_p8 = pnand %p2980_p7, %p2977_p6 }
0x133a   : > { %2985 = shalt.err (!%p2982_p8)
}
0x133b   : > { %2843 = dma.vmem_to_hbm [thread:$0]  (%p3501_p10), %s2377_s6, 32, %s3588_s30, [#allocation6]  }
0x133c   : > { %2999 = dma.done.wait (%p3501_p10), [#allocation6], 32  }
0x133d   : > { %3001 = vsyncadd (%p3501_p10), [#allocation6], 4294967264 }
0x133e PF: > { %s3589_s25 = sld [smem:[#allocation9_spill]]  ;;  %s3590_s27 = sld [smem:[#allocation8_spill]] }
0x133f   : > { %s3591_s28 = sld [smem:[#allocation10_spill]] }
0x1344   : > { %s29_s29 = sadd.s32 1, %s3589_s25  }
0x1345   : > { %p26_p9 = scmp.ge.s32.totalorder %s29_s29, 4  }
0x1347   :  { %28 = sbr.rel (!%p26_p9) target bundleno = 12 (0xc), region = 172 }
0x134e   :  { %2389 = vsyncpa [#allocation6], 1 }
0x134f   :  { %2391 = vsyncpa [#allocation6 + $0x1], 1 }

</bundles_post_ra>
